<compile_context>
chip_gen: v7x
topology: tpu7x:2x2x1
jax: 0.10.0
libtpu: 0.0.40
codegen_flags: <defaults>
</compile_context>

<pallas_src>
import math
import functools

import jax
import jax.numpy as jnp
from jax.experimental import pallas as pl
from jax.experimental.pallas import tpu as pltpu


def make_sinusoidal_pe(max_len: int, dim: int) -> jnp.ndarray:
    """Builds the [max_len, dim] sinusoidal table exactly like the PyTorch __init__."""
    assert dim % 2 == 0, "sinusoidal PE requires an even `dim`"
    position = jnp.arange(max_len, dtype=jnp.float32)[:, None]              # (L, 1)
    div_term = jnp.exp(
        jnp.arange(0, dim, 2, dtype=jnp.float32) * -(math.log(10000.0) / dim)
    )                                                                        # (dim/2,)
    pe = jnp.zeros((max_len, dim), dtype=jnp.float32)
    pe = pe.at[:, 0::2].set(jnp.sin(position * div_term))
    pe = pe.at[:, 1::2].set(jnp.cos(position * div_term))
    return pe


def _pos_enc_kernel(ids_ref, w_hbm, pe_ref, o_ref, gather_buf, sems, *,
                    scale: float, seq_len: int, tile_s: int):
    """One grid step = one (sequence tile, batch row).

    ids_ref:    (B*S,) int32 in SMEM (scalar prefetch) — token indices (DMA addresses).
    w_hbm:      (V, D) float32 raw HBM ref (memory_space=pl.ANY) — embedding table.
    pe_ref:     (tile_s, D) float32 VMEM — PE rows for this sequence tile.
    o_ref:      (1, tile_s, D) float32 VMEM output tile.
    gather_buf: (2, tile_s, D) float32 VMEM — double-buffered DMA-gathered rows.
    sems:       (2,) DMA semaphores — one shared semaphore per buffer slot.
    """
    st = pl.program_id(0)            # sequence-tile index (outer, "parallel")
    b = pl.program_id(1)             # batch row (inner, sequential)
    n_b = pl.num_programs(1)
    slot = b % 2

    def issue_rows(b_idx, slot_idx):
        # Issue every row gather for batch row `b_idx` of this sequence tile; all copies
        # signal the slot's shared semaphore so the per-row latencies overlap.
        base = b_idx * seq_len + st * tile_s
        for r in range(tile_s):
            tok = ids_ref[base + r]
            pltpu.make_async_copy(
                w_hbm.at[pl.ds(tok, 1), :],
                gather_buf.at[slot_idx, pl.ds(r, 1), :],
                sems.at[slot_idx],
            ).start()

    # First inner iteration of each sequence tile: gather its own rows (prefetch chain
    # restarts here, so splitting the outer axis across TensorCores stays correct).
    @pl.when(b == 0)
    def _():
        issue_rows(b, slot)

    # Prefetch the NEXT batch row's rows into the other slot before waiting, so the
    # HBM round trip of step b+1 is hidden behind this step's wait/compute/writeback.
    @pl.when(b + 1 < n_b)
    def _():
        issue_rows(b + 1, 1 - slot)

    # Accumulated wait: tile_s row copies of D*4 bytes each signaled sems[slot]; a single
    # descriptor spanning (tile_s, D) waits for the full tile_s*D*4 bytes.
    pltpu.make_async_copy(
        w_hbm.at[pl.ds(0, tile_s), :],
        gather_buf.at[slot],
        sems.at[slot],
    ).wait()

    # Single fused VPU pass: emb * sqrt(dim) + PE.
    o_ref[0] = gather_buf[slot] * scale + pe_ref[...]


def positional_encoding_forward(token_ids, weight, pe_table, *, tile_s=None):
    """Equivalent of PositionalEncoding.forward(x, step=None) with dropout_prob=0."""
    B, S = token_ids.shape
    V, D = weight.shape
    L, Dp = pe_table.shape
    assert Dp == D, "embedding_dim must equal dim for the PE add to broadcast"
    assert L >= S, "max_len must cover the sequence length"
    assert D % 128 == 0, "embedding dim must be lane-dense (multiple of 128); pad it"
    scale = math.sqrt(D)

    if tile_s is None:
        if S <= 128:
            tile_s = S
        else:
            cands = [c for c in (128, 64, 32, 16, 8) if S % c == 0]
            tile_s = cands[0] if cands else S
    assert S % tile_s == 0, "sequence length must be divisible by the sequence tile"
    assert tile_s % 8 == 0, "sequence tile must be a multiple of 8 (f32 sublane packing)"
    assert V >= tile_s, "vocab must have at least tile_s rows (accumulated-wait descriptor)"

    # Ids are addresses, not vectors: flatten to 1-D and scalar-prefetch into SMEM.
    # (Out-of-range ids fault under the default DMA bounds check, matching PyTorch's error.)
    ids_flat = token_ids.reshape(-1).astype(jnp.int32)

    kernel = functools.partial(_pos_enc_kernel, scale=scale, seq_len=S, tile_s=tile_s)

    return pl.pallas_call(
        kernel,
        out_shape=jax.ShapeDtypeStruct((B, S, D), jnp.float32),
        grid_spec=pltpu.PrefetchScalarGridSpec(
            num_scalar_prefetch=1,
            grid=(S // tile_s, B),                                         # b innermost
            in_specs=[
                pl.BlockSpec(memory_space=pl.ANY),                         # weight: HBM
                pl.BlockSpec((tile_s, D), lambda st, b, ids: (st, 0)),     # PE seq tile
            ],
            out_specs=pl.BlockSpec((1, tile_s, D), lambda st, b, ids: (b, st, 0)),
            scratch_shapes=[
                pltpu.VMEM((2, tile_s, D), jnp.float32),   # double-buffered gather rows
                pltpu.SemaphoreType.DMA((2,)),             # one shared DMA sem per slot
            ],
        ),
        compiler_params=pltpu.CompilerParams(
            dimension_semantics=("parallel", "arbitrary"),
        ),
    )(ids_flat, weight, pe_table)


if __name__ == "__main__":
    # Small, module-consistent shapes (D chosen lane-dense = 128).
    B, S = 2, 8
    num_embeddings = 32          # vocab size V
    embedding_dim = 128          # must equal `dim` for the PE add to broadcast
    dim = embedding_dim
    max_len = 64
    padding_idx = 0

    key = jax.random.PRNGKey(0)
    k_w, k_ids = jax.random.split(key)

    # nn.Embedding init: N(0, 1), with the padding_idx row zeroed.
    weight = jax.random.normal(k_w, (num_embeddings, embedding_dim), dtype=jnp.float32)
    weight = weight.at[padding_idx].set(0.0)

    pe_table = make_sinusoidal_pe(max_len, dim)

    token_ids = jax.random.randint(k_ids, (B, S), 0, num_embeddings, dtype=jnp.int32)

    out = positional_encoding_forward(token_ids, weight, pe_table)
    out = jax.block_until_ready(out)

    # Pure-JAX reference for the same forward pass (dropout p=0.0 is identity).
    ref = weight[token_ids] * math.sqrt(dim) + pe_table[None, :S, :]
    assert out.shape == (B, S, dim)
    assert jnp.allclose(out, ref, atol=1e-5, rtol=1e-5), "mismatch vs reference"

    print("KERNEL_OK")
</pallas_src>

<mosaic_0001>
module attributes {stable_mosaic.version = 11 : i64} {
  func.func @_pos_enc_kernel(%arg0: i32, %arg1: i32, %arg2: memref<16xi32, #tpu.memory_space<smem>>, %arg3: memref<32x128xf32, #tpu.memory_space<any>>, %arg4: memref<8x128xf32, #tpu.memory_space<vmem>>, %arg5: memref<1x8x128xf32, #tpu.memory_space<vmem>>, %arg6: memref<2x8x128xf32, #tpu.memory_space<vmem>>, %arg7: memref<2x!tpu.dma_semaphore, #tpu.memory_space<semaphore_mem>>) attributes {dimension_semantics = [#tpu.dimension_semantics<parallel>, #tpu.dimension_semantics<arbitrary>], iteration_bounds = array<i64: 1, 2>, scalar_prefetch = 1 : i64, scratch_operands = 2 : i64, tpu.core_type = #tpu.core_type<tc>, window_params = [{}, {transform_indices = @transform_1, window_bounds = array<i64: 8, 128>}, {transform_indices = @transform_2, window_bounds = array<i64: 1, 8, 128>}]} {
    %c2_i32 = arith.constant 2 : i32
    %c0_i32 = arith.constant 0 : i32
    %0 = arith.cmpi eq, %c2_i32, %c0_i32 : i32
    %c1_i32 = arith.constant 1 : i32
    %1 = arith.select %0, %c1_i32, %c2_i32 : i32
    %2 = arith.remsi %arg1, %1 : i32
    %c0_i32_0 = arith.constant 0 : i32
    %3 = arith.cmpi ne, %2, %c0_i32_0 : i32
    %c0_i32_1 = arith.constant 0 : i32
    %4 = arith.cmpi slt, %2, %c0_i32_1 : i32
    %c0_i32_2 = arith.constant 0 : i32
    %5 = arith.cmpi slt, %1, %c0_i32_2 : i32
    %6 = arith.xori %4, %5 : i1
    %7 = arith.andi %6, %3 : i1
    %8 = arith.addi %2, %1 : i32
    %9 = arith.select %7, %8, %2 : i32
    %c0_i32_3 = arith.constant 0 : i32
    %10 = arith.cmpi eq, %arg1, %c0_i32_3 : i32
    %11 = arith.extui %10 : i1 to i32
    %c0_i32_4 = arith.constant 0 : i32
    %12 = arith.cmpi ne, %11, %c0_i32_4 : i32
    scf.if %12 {
      %c8_i32 = arith.constant 8 : i32
      %32 = arith.muli %arg1, %c8_i32 : i32
      %c8_i32_18 = arith.constant 8 : i32
      %33 = arith.muli %arg0, %c8_i32_18 : i32
      %34 = arith.addi %32, %33 : i32
      %c0_i32_19 = arith.constant 0 : i32
      %35 = arith.addi %34, %c0_i32_19 : i32
      %36 = arith.index_cast %35 : i32 to index
      %37 = memref.load %arg2[%36] : memref<16xi32, #tpu.memory_space<smem>>
      %c0_i32_20 = arith.constant 0 : i32
      %38 = tpu.memref_slice %arg3[%37, %c0_i32_20] : memref<32x128xf32, #tpu.memory_space<any>> -> memref<1x128xf32, #tpu.memory_space<any>>
      %c0_i32_21 = arith.constant 0 : i32
      %c0_i32_22 = arith.constant 0 : i32
      %39 = tpu.memref_slice %arg6[%9, %c0_i32_21, %c0_i32_22] : memref<2x8x128xf32, #tpu.memory_space<vmem>> -> memref<1x1x128xf32, #tpu.memory_space<vmem>>
      %40 = tpu.memref_squeeze %39 : memref<1x1x128xf32, #tpu.memory_space<vmem>> -> memref<1x128xf32, #tpu.memory_space<vmem>>
      %41 = tpu.memref_slice %arg7[%9] : memref<2x!tpu.dma_semaphore, #tpu.memory_space<semaphore_mem>> -> memref<1x!tpu.dma_semaphore, #tpu.memory_space<semaphore_mem>>
      %42 = tpu.memref_squeeze %41 : memref<1x!tpu.dma_semaphore, #tpu.memory_space<semaphore_mem>> -> memref<!tpu.dma_semaphore, #tpu.memory_space<semaphore_mem>>
      tpu.enqueue_dma source(%38 : memref<1x128xf32, #tpu.memory_space<any>>) target(%40 : memref<1x128xf32, #tpu.memory_space<vmem>>) target_semaphore(%42 : memref<!tpu.dma_semaphore, #tpu.memory_space<semaphore_mem>>)
      %c1_i32_23 = arith.constant 1 : i32
      %43 = arith.addi %34, %c1_i32_23 : i32
      %44 = arith.index_cast %43 : i32 to index
      %45 = memref.load %arg2[%44] : memref<16xi32, #tpu.memory_space<smem>>
      %c0_i32_24 = arith.constant 0 : i32
      %46 = tpu.memref_slice %arg3[%45, %c0_i32_24] : memref<32x128xf32, #tpu.memory_space<any>> -> memref<1x128xf32, #tpu.memory_space<any>>
      %c1_i32_25 = arith.constant 1 : i32
      %c0_i32_26 = arith.constant 0 : i32
      %47 = tpu.memref_slice %arg6[%9, %c1_i32_25, %c0_i32_26] : memref<2x8x128xf32, #tpu.memory_space<vmem>> -> memref<1x1x128xf32, #tpu.memory_space<vmem>>
      %48 = tpu.memref_squeeze %47 : memref<1x1x128xf32, #tpu.memory_space<vmem>> -> memref<1x128xf32, #tpu.memory_space<vmem>>
      %49 = tpu.memref_slice %arg7[%9] : memref<2x!tpu.dma_semaphore, #tpu.memory_space<semaphore_mem>> -> memref<1x!tpu.dma_semaphore, #tpu.memory_space<semaphore_mem>>
      %50 = tpu.memref_squeeze %49 : memref<1x!tpu.dma_semaphore, #tpu.memory_space<semaphore_mem>> -> memref<!tpu.dma_semaphore, #tpu.memory_space<semaphore_mem>>
      tpu.enqueue_dma source(%46 : memref<1x128xf32, #tpu.memory_space<any>>) target(%48 : memref<1x128xf32, #tpu.memory_space<vmem>>) target_semaphore(%50 : memref<!tpu.dma_semaphore, #tpu.memory_space<semaphore_mem>>)
      %c2_i32_27 = arith.constant 2 : i32
      %51 = arith.addi %34, %c2_i32_27 : i32
      %52 = arith.index_cast %51 : i32 to index
      %53 = memref.load %arg2[%52] : memref<16xi32, #tpu.memory_space<smem>>
      %c0_i32_28 = arith.constant 0 : i32
      %54 = tpu.memref_slice %arg3[%53, %c0_i32_28] : memref<32x128xf32, #tpu.memory_space<any>> -> memref<1x128xf32, #tpu.memory_space<any>>
      %c2_i32_29 = arith.constant 2 : i32
      %c0_i32_30 = arith.constant 0 : i32
      %55 = tpu.memref_slice %arg6[%9, %c2_i32_29, %c0_i32_30] : memref<2x8x128xf32, #tpu.memory_space<vmem>> -> memref<1x1x128xf32, #tpu.memory_space<vmem>>
      %56 = tpu.memref_squeeze %55 : memref<1x1x128xf32, #tpu.memory_space<vmem>> -> memref<1x128xf32, #tpu.memory_space<vmem>>
      %57 = tpu.memref_slice %arg7[%9] : memref<2x!tpu.dma_semaphore, #tpu.memory_space<semaphore_mem>> -> memref<1x!tpu.dma_semaphore, #tpu.memory_space<semaphore_mem>>
      %58 = tpu.memref_squeeze %57 : memref<1x!tpu.dma_semaphore, #tpu.memory_space<semaphore_mem>> -> memref<!tpu.dma_semaphore, #tpu.memory_space<semaphore_mem>>
      tpu.enqueue_dma source(%54 : memref<1x128xf32, #tpu.memory_space<any>>) target(%56 : memref<1x128xf32, #tpu.memory_space<vmem>>) target_semaphore(%58 : memref<!tpu.dma_semaphore, #tpu.memory_space<semaphore_mem>>)
      %c3_i32 = arith.constant 3 : i32
      %59 = arith.addi %34, %c3_i32 : i32
      %60 = arith.index_cast %59 : i32 to index
      %61 = memref.load %arg2[%60] : memref<16xi32, #tpu.memory_space<smem>>
      %c0_i32_31 = arith.constant 0 : i32
      %62 = tpu.memref_slice %arg3[%61, %c0_i32_31] : memref<32x128xf32, #tpu.memory_space<any>> -> memref<1x128xf32, #tpu.memory_space<any>>
      %c3_i32_32 = arith.constant 3 : i32
      %c0_i32_33 = arith.constant 0 : i32
      %63 = tpu.memref_slice %arg6[%9, %c3_i32_32, %c0_i32_33] : memref<2x8x128xf32, #tpu.memory_space<vmem>> -> memref<1x1x128xf32, #tpu.memory_space<vmem>>
      %64 = tpu.memref_squeeze %63 : memref<1x1x128xf32, #tpu.memory_space<vmem>> -> memref<1x128xf32, #tpu.memory_space<vmem>>
      %65 = tpu.memref_slice %arg7[%9] : memref<2x!tpu.dma_semaphore, #tpu.memory_space<semaphore_mem>> -> memref<1x!tpu.dma_semaphore, #tpu.memory_space<semaphore_mem>>
      %66 = tpu.memref_squeeze %65 : memref<1x!tpu.dma_semaphore, #tpu.memory_space<semaphore_mem>> -> memref<!tpu.dma_semaphore, #tpu.memory_space<semaphore_mem>>
      tpu.enqueue_dma source(%62 : memref<1x128xf32, #tpu.memory_space<any>>) target(%64 : memref<1x128xf32, #tpu.memory_space<vmem>>) target_semaphore(%66 : memref<!tpu.dma_semaphore, #tpu.memory_space<semaphore_mem>>)
      %c4_i32 = arith.constant 4 : i32
      %67 = arith.addi %34, %c4_i32 : i32
      %68 = arith.index_cast %67 : i32 to index
      %69 = memref.load %arg2[%68] : memref<16xi32, #tpu.memory_space<smem>>
      %c0_i32_34 = arith.constant 0 : i32
      %70 = tpu.memref_slice %arg3[%69, %c0_i32_34] : memref<32x128xf32, #tpu.memory_space<any>> -> memref<1x128xf32, #tpu.memory_space<any>>
      %c4_i32_35 = arith.constant 4 : i32
      %c0_i32_36 = arith.constant 0 : i32
      %71 = tpu.memref_slice %arg6[%9, %c4_i32_35, %c0_i32_36] : memref<2x8x128xf32, #tpu.memory_space<vmem>> -> memref<1x1x128xf32, #tpu.memory_space<vmem>>
      %72 = tpu.memref_squeeze %71 : memref<1x1x128xf32, #tpu.memory_space<vmem>> -> memref<1x128xf32, #tpu.memory_space<vmem>>
      %73 = tpu.memref_slice %arg7[%9] : memref<2x!tpu.dma_semaphore, #tpu.memory_space<semaphore_mem>> -> memref<1x!tpu.dma_semaphore, #tpu.memory_space<semaphore_mem>>
      %74 = tpu.memref_squeeze %73 : memref<1x!tpu.dma_semaphore, #tpu.memory_space<semaphore_mem>> -> memref<!tpu.dma_semaphore, #tpu.memory_space<semaphore_mem>>
      tpu.enqueue_dma source(%70 : memref<1x128xf32, #tpu.memory_space<any>>) target(%72 : memref<1x128xf32, #tpu.memory_space<vmem>>) target_semaphore(%74 : memref<!tpu.dma_semaphore, #tpu.memory_space<semaphore_mem>>)
      %c5_i32 = arith.constant 5 : i32
      %75 = arith.addi %34, %c5_i32 : i32
      %76 = arith.index_cast %75 : i32 to index
      %77 = memref.load %arg2[%76] : memref<16xi32, #tpu.memory_space<smem>>
      %c0_i32_37 = arith.constant 0 : i32
      %78 = tpu.memref_slice %arg3[%77, %c0_i32_37] : memref<32x128xf32, #tpu.memory_space<any>> -> memref<1x128xf32, #tpu.memory_space<any>>
      %c5_i32_38 = arith.constant 5 : i32
      %c0_i32_39 = arith.constant 0 : i32
      %79 = tpu.memref_slice %arg6[%9, %c5_i32_38, %c0_i32_39] : memref<2x8x128xf32, #tpu.memory_space<vmem>> -> memref<1x1x128xf32, #tpu.memory_space<vmem>>
      %80 = tpu.memref_squeeze %79 : memref<1x1x128xf32, #tpu.memory_space<vmem>> -> memref<1x128xf32, #tpu.memory_space<vmem>>
      %81 = tpu.memref_slice %arg7[%9] : memref<2x!tpu.dma_semaphore, #tpu.memory_space<semaphore_mem>> -> memref<1x!tpu.dma_semaphore, #tpu.memory_space<semaphore_mem>>
      %82 = tpu.memref_squeeze %81 : memref<1x!tpu.dma_semaphore, #tpu.memory_space<semaphore_mem>> -> memref<!tpu.dma_semaphore, #tpu.memory_space<semaphore_mem>>
      tpu.enqueue_dma source(%78 : memref<1x128xf32, #tpu.memory_space<any>>) target(%80 : memref<1x128xf32, #tpu.memory_space<vmem>>) target_semaphore(%82 : memref<!tpu.dma_semaphore, #tpu.memory_space<semaphore_mem>>)
      %c6_i32 = arith.constant 6 : i32
      %83 = arith.addi %34, %c6_i32 : i32
      %84 = arith.index_cast %83 : i32 to index
      %85 = memref.load %arg2[%84] : memref<16xi32, #tpu.memory_space<smem>>
      %c0_i32_40 = arith.constant 0 : i32
      %86 = tpu.memref_slice %arg3[%85, %c0_i32_40] : memref<32x128xf32, #tpu.memory_space<any>> -> memref<1x128xf32, #tpu.memory_space<any>>
      %c6_i32_41 = arith.constant 6 : i32
      %c0_i32_42 = arith.constant 0 : i32
      %87 = tpu.memref_slice %arg6[%9, %c6_i32_41, %c0_i32_42] : memref<2x8x128xf32, #tpu.memory_space<vmem>> -> memref<1x1x128xf32, #tpu.memory_space<vmem>>
      %88 = tpu.memref_squeeze %87 : memref<1x1x128xf32, #tpu.memory_space<vmem>> -> memref<1x128xf32, #tpu.memory_space<vmem>>
      %89 = tpu.memref_slice %arg7[%9] : memref<2x!tpu.dma_semaphore, #tpu.memory_space<semaphore_mem>> -> memref<1x!tpu.dma_semaphore, #tpu.memory_space<semaphore_mem>>
      %90 = tpu.memref_squeeze %89 : memref<1x!tpu.dma_semaphore, #tpu.memory_space<semaphore_mem>> -> memref<!tpu.dma_semaphore, #tpu.memory_space<semaphore_mem>>
      tpu.enqueue_dma source(%86 : memref<1x128xf32, #tpu.memory_space<any>>) target(%88 : memref<1x128xf32, #tpu.memory_space<vmem>>) target_semaphore(%90 : memref<!tpu.dma_semaphore, #tpu.memory_space<semaphore_mem>>)
      %c7_i32 = arith.constant 7 : i32
      %91 = arith.addi %34, %c7_i32 : i32
      %92 = arith.index_cast %91 : i32 to index
      %93 = memref.load %arg2[%92] : memref<16xi32, #tpu.memory_space<smem>>
      %c0_i32_43 = arith.constant 0 : i32
      %94 = tpu.memref_slice %arg3[%93, %c0_i32_43] : memref<32x128xf32, #tpu.memory_space<any>> -> memref<1x128xf32, #tpu.memory_space<any>>
      %c7_i32_44 = arith.constant 7 : i32
      %c0_i32_45 = arith.constant 0 : i32
      %95 = tpu.memref_slice %arg6[%9, %c7_i32_44, %c0_i32_45] : memref<2x8x128xf32, #tpu.memory_space<vmem>> -> memref<1x1x128xf32, #tpu.memory_space<vmem>>
      %96 = tpu.memref_squeeze %95 : memref<1x1x128xf32, #tpu.memory_space<vmem>> -> memref<1x128xf32, #tpu.memory_space<vmem>>
      %97 = tpu.memref_slice %arg7[%9] : memref<2x!tpu.dma_semaphore, #tpu.memory_space<semaphore_mem>> -> memref<1x!tpu.dma_semaphore, #tpu.memory_space<semaphore_mem>>
      %98 = tpu.memref_squeeze %97 : memref<1x!tpu.dma_semaphore, #tpu.memory_space<semaphore_mem>> -> memref<!tpu.dma_semaphore, #tpu.memory_space<semaphore_mem>>
      tpu.enqueue_dma source(%94 : memref<1x128xf32, #tpu.memory_space<any>>) target(%96 : memref<1x128xf32, #tpu.memory_space<vmem>>) target_semaphore(%98 : memref<!tpu.dma_semaphore, #tpu.memory_space<semaphore_mem>>)
    } else {
    }
    %c1_i32_5 = arith.constant 1 : i32
    %13 = arith.addi %arg1, %c1_i32_5 : i32
    %c2_i32_6 = arith.constant 2 : i32
    %14 = arith.cmpi slt, %13, %c2_i32_6 : i32
    %15 = arith.extui %14 : i1 to i32
    %c0_i32_7 = arith.constant 0 : i32
    %16 = arith.cmpi ne, %15, %c0_i32_7 : i32
    scf.if %16 {
      %c1_i32_18 = arith.constant 1 : i32
      %32 = arith.addi %arg1, %c1_i32_18 : i32
      %c1_i32_19 = arith.constant 1 : i32
      %33 = arith.subi %c1_i32_19, %9 : i32
      %c8_i32 = arith.constant 8 : i32
      %34 = arith.muli %32, %c8_i32 : i32
      %c8_i32_20 = arith.constant 8 : i32
      %35 = arith.muli %arg0, %c8_i32_20 : i32
      %36 = arith.addi %34, %35 : i32
      %c0_i32_21 = arith.constant 0 : i32
      %37 = arith.addi %36, %c0_i32_21 : i32
      %38 = arith.index_cast %37 : i32 to index
      %39 = memref.load %arg2[%38] : memref<16xi32, #tpu.memory_space<smem>>
      %c0_i32_22 = arith.constant 0 : i32
      %40 = tpu.memref_slice %arg3[%39, %c0_i32_22] : memref<32x128xf32, #tpu.memory_space<any>> -> memref<1x128xf32, #tpu.memory_space<any>>
      %c0_i32_23 = arith.constant 0 : i32
      %c0_i32_24 = arith.constant 0 : i32
      %41 = tpu.memref_slice %arg6[%33, %c0_i32_23, %c0_i32_24] : memref<2x8x128xf32, #tpu.memory_space<vmem>> -> memref<1x1x128xf32, #tpu.memory_space<vmem>>
      %42 = tpu.memref_squeeze %41 : memref<1x1x128xf32, #tpu.memory_space<vmem>> -> memref<1x128xf32, #tpu.memory_space<vmem>>
      %43 = tpu.memref_slice %arg7[%33] : memref<2x!tpu.dma_semaphore, #tpu.memory_space<semaphore_mem>> -> memref<1x!tpu.dma_semaphore, #tpu.memory_space<semaphore_mem>>
      %44 = tpu.memref_squeeze %43 : memref<1x!tpu.dma_semaphore, #tpu.memory_space<semaphore_mem>> -> memref<!tpu.dma_semaphore, #tpu.memory_space<semaphore_mem>>
      tpu.enqueue_dma source(%40 : memref<1x128xf32, #tpu.memory_space<any>>) target(%42 : memref<1x128xf32, #tpu.memory_space<vmem>>) target_semaphore(%44 : memref<!tpu.dma_semaphore, #tpu.memory_space<semaphore_mem>>)
      %c1_i32_25 = arith.constant 1 : i32
      %45 = arith.addi %36, %c1_i32_25 : i32
      %46 = arith.index_cast %45 : i32 to index
      %47 = memref.load %arg2[%46] : memref<16xi32, #tpu.memory_space<smem>>
      %c0_i32_26 = arith.constant 0 : i32
      %48 = tpu.memref_slice %arg3[%47, %c0_i32_26] : memref<32x128xf32, #tpu.memory_space<any>> -> memref<1x128xf32, #tpu.memory_space<any>>
      %c1_i32_27 = arith.constant 1 : i32
      %c0_i32_28 = arith.constant 0 : i32
      %49 = tpu.memref_slice %arg6[%33, %c1_i32_27, %c0_i32_28] : memref<2x8x128xf32, #tpu.memory_space<vmem>> -> memref<1x1x128xf32, #tpu.memory_space<vmem>>
      %50 = tpu.memref_squeeze %49 : memref<1x1x128xf32, #tpu.memory_space<vmem>> -> memref<1x128xf32, #tpu.memory_space<vmem>>
      %51 = tpu.memref_slice %arg7[%33] : memref<2x!tpu.dma_semaphore, #tpu.memory_space<semaphore_mem>> -> memref<1x!tpu.dma_semaphore, #tpu.memory_space<semaphore_mem>>
      %52 = tpu.memref_squeeze %51 : memref<1x!tpu.dma_semaphore, #tpu.memory_space<semaphore_mem>> -> memref<!tpu.dma_semaphore, #tpu.memory_space<semaphore_mem>>
      tpu.enqueue_dma source(%48 : memref<1x128xf32, #tpu.memory_space<any>>) target(%50 : memref<1x128xf32, #tpu.memory_space<vmem>>) target_semaphore(%52 : memref<!tpu.dma_semaphore, #tpu.memory_space<semaphore_mem>>)
      %c2_i32_29 = arith.constant 2 : i32
      %53 = arith.addi %36, %c2_i32_29 : i32
      %54 = arith.index_cast %53 : i32 to index
      %55 = memref.load %arg2[%54] : memref<16xi32, #tpu.memory_space<smem>>
      %c0_i32_30 = arith.constant 0 : i32
      %56 = tpu.memref_slice %arg3[%55, %c0_i32_30] : memref<32x128xf32, #tpu.memory_space<any>> -> memref<1x128xf32, #tpu.memory_space<any>>
      %c2_i32_31 = arith.constant 2 : i32
      %c0_i32_32 = arith.constant 0 : i32
      %57 = tpu.memref_slice %arg6[%33, %c2_i32_31, %c0_i32_32] : memref<2x8x128xf32, #tpu.memory_space<vmem>> -> memref<1x1x128xf32, #tpu.memory_space<vmem>>
      %58 = tpu.memref_squeeze %57 : memref<1x1x128xf32, #tpu.memory_space<vmem>> -> memref<1x128xf32, #tpu.memory_space<vmem>>
      %59 = tpu.memref_slice %arg7[%33] : memref<2x!tpu.dma_semaphore, #tpu.memory_space<semaphore_mem>> -> memref<1x!tpu.dma_semaphore, #tpu.memory_space<semaphore_mem>>
      %60 = tpu.memref_squeeze %59 : memref<1x!tpu.dma_semaphore, #tpu.memory_space<semaphore_mem>> -> memref<!tpu.dma_semaphore, #tpu.memory_space<semaphore_mem>>
      tpu.enqueue_dma source(%56 : memref<1x128xf32, #tpu.memory_space<any>>) target(%58 : memref<1x128xf32, #tpu.memory_space<vmem>>) target_semaphore(%60 : memref<!tpu.dma_semaphore, #tpu.memory_space<semaphore_mem>>)
      %c3_i32 = arith.constant 3 : i32
      %61 = arith.addi %36, %c3_i32 : i32
      %62 = arith.index_cast %61 : i32 to index
      %63 = memref.load %arg2[%62] : memref<16xi32, #tpu.memory_space<smem>>
      %c0_i32_33 = arith.constant 0 : i32
      %64 = tpu.memref_slice %arg3[%63, %c0_i32_33] : memref<32x128xf32, #tpu.memory_space<any>> -> memref<1x128xf32, #tpu.memory_space<any>>
      %c3_i32_34 = arith.constant 3 : i32
      %c0_i32_35 = arith.constant 0 : i32
      %65 = tpu.memref_slice %arg6[%33, %c3_i32_34, %c0_i32_35] : memref<2x8x128xf32, #tpu.memory_space<vmem>> -> memref<1x1x128xf32, #tpu.memory_space<vmem>>
      %66 = tpu.memref_squeeze %65 : memref<1x1x128xf32, #tpu.memory_space<vmem>> -> memref<1x128xf32, #tpu.memory_space<vmem>>
      %67 = tpu.memref_slice %arg7[%33] : memref<2x!tpu.dma_semaphore, #tpu.memory_space<semaphore_mem>> -> memref<1x!tpu.dma_semaphore, #tpu.memory_space<semaphore_mem>>
      %68 = tpu.memref_squeeze %67 : memref<1x!tpu.dma_semaphore, #tpu.memory_space<semaphore_mem>> -> memref<!tpu.dma_semaphore, #tpu.memory_space<semaphore_mem>>
      tpu.enqueue_dma source(%64 : memref<1x128xf32, #tpu.memory_space<any>>) target(%66 : memref<1x128xf32, #tpu.memory_space<vmem>>) target_semaphore(%68 : memref<!tpu.dma_semaphore, #tpu.memory_space<semaphore_mem>>)
      %c4_i32 = arith.constant 4 : i32
      %69 = arith.addi %36, %c4_i32 : i32
      %70 = arith.index_cast %69 : i32 to index
      %71 = memref.load %arg2[%70] : memref<16xi32, #tpu.memory_space<smem>>
      %c0_i32_36 = arith.constant 0 : i32
      %72 = tpu.memref_slice %arg3[%71, %c0_i32_36] : memref<32x128xf32, #tpu.memory_space<any>> -> memref<1x128xf32, #tpu.memory_space<any>>
      %c4_i32_37 = arith.constant 4 : i32
      %c0_i32_38 = arith.constant 0 : i32
      %73 = tpu.memref_slice %arg6[%33, %c4_i32_37, %c0_i32_38] : memref<2x8x128xf32, #tpu.memory_space<vmem>> -> memref<1x1x128xf32, #tpu.memory_space<vmem>>
      %74 = tpu.memref_squeeze %73 : memref<1x1x128xf32, #tpu.memory_space<vmem>> -> memref<1x128xf32, #tpu.memory_space<vmem>>
      %75 = tpu.memref_slice %arg7[%33] : memref<2x!tpu.dma_semaphore, #tpu.memory_space<semaphore_mem>> -> memref<1x!tpu.dma_semaphore, #tpu.memory_space<semaphore_mem>>
      %76 = tpu.memref_squeeze %75 : memref<1x!tpu.dma_semaphore, #tpu.memory_space<semaphore_mem>> -> memref<!tpu.dma_semaphore, #tpu.memory_space<semaphore_mem>>
      tpu.enqueue_dma source(%72 : memref<1x128xf32, #tpu.memory_space<any>>) target(%74 : memref<1x128xf32, #tpu.memory_space<vmem>>) target_semaphore(%76 : memref<!tpu.dma_semaphore, #tpu.memory_space<semaphore_mem>>)
      %c5_i32 = arith.constant 5 : i32
      %77 = arith.addi %36, %c5_i32 : i32
      %78 = arith.index_cast %77 : i32 to index
      %79 = memref.load %arg2[%78] : memref<16xi32, #tpu.memory_space<smem>>
      %c0_i32_39 = arith.constant 0 : i32
      %80 = tpu.memref_slice %arg3[%79, %c0_i32_39] : memref<32x128xf32, #tpu.memory_space<any>> -> memref<1x128xf32, #tpu.memory_space<any>>
      %c5_i32_40 = arith.constant 5 : i32
      %c0_i32_41 = arith.constant 0 : i32
      %81 = tpu.memref_slice %arg6[%33, %c5_i32_40, %c0_i32_41] : memref<2x8x128xf32, #tpu.memory_space<vmem>> -> memref<1x1x128xf32, #tpu.memory_space<vmem>>
      %82 = tpu.memref_squeeze %81 : memref<1x1x128xf32, #tpu.memory_space<vmem>> -> memref<1x128xf32, #tpu.memory_space<vmem>>
      %83 = tpu.memref_slice %arg7[%33] : memref<2x!tpu.dma_semaphore, #tpu.memory_space<semaphore_mem>> -> memref<1x!tpu.dma_semaphore, #tpu.memory_space<semaphore_mem>>
      %84 = tpu.memref_squeeze %83 : memref<1x!tpu.dma_semaphore, #tpu.memory_space<semaphore_mem>> -> memref<!tpu.dma_semaphore, #tpu.memory_space<semaphore_mem>>
      tpu.enqueue_dma source(%80 : memref<1x128xf32, #tpu.memory_space<any>>) target(%82 : memref<1x128xf32, #tpu.memory_space<vmem>>) target_semaphore(%84 : memref<!tpu.dma_semaphore, #tpu.memory_space<semaphore_mem>>)
      %c6_i32 = arith.constant 6 : i32
      %85 = arith.addi %36, %c6_i32 : i32
      %86 = arith.index_cast %85 : i32 to index
      %87 = memref.load %arg2[%86] : memref<16xi32, #tpu.memory_space<smem>>
      %c0_i32_42 = arith.constant 0 : i32
      %88 = tpu.memref_slice %arg3[%87, %c0_i32_42] : memref<32x128xf32, #tpu.memory_space<any>> -> memref<1x128xf32, #tpu.memory_space<any>>
      %c6_i32_43 = arith.constant 6 : i32
      %c0_i32_44 = arith.constant 0 : i32
      %89 = tpu.memref_slice %arg6[%33, %c6_i32_43, %c0_i32_44] : memref<2x8x128xf32, #tpu.memory_space<vmem>> -> memref<1x1x128xf32, #tpu.memory_space<vmem>>
      %90 = tpu.memref_squeeze %89 : memref<1x1x128xf32, #tpu.memory_space<vmem>> -> memref<1x128xf32, #tpu.memory_space<vmem>>
      %91 = tpu.memref_slice %arg7[%33] : memref<2x!tpu.dma_semaphore, #tpu.memory_space<semaphore_mem>> -> memref<1x!tpu.dma_semaphore, #tpu.memory_space<semaphore_mem>>
      %92 = tpu.memref_squeeze %91 : memref<1x!tpu.dma_semaphore, #tpu.memory_space<semaphore_mem>> -> memref<!tpu.dma_semaphore, #tpu.memory_space<semaphore_mem>>
      tpu.enqueue_dma source(%88 : memref<1x128xf32, #tpu.memory_space<any>>) target(%90 : memref<1x128xf32, #tpu.memory_space<vmem>>) target_semaphore(%92 : memref<!tpu.dma_semaphore, #tpu.memory_space<semaphore_mem>>)
      %c7_i32 = arith.constant 7 : i32
      %93 = arith.addi %36, %c7_i32 : i32
      %94 = arith.index_cast %93 : i32 to index
      %95 = memref.load %arg2[%94] : memref<16xi32, #tpu.memory_space<smem>>
      %c0_i32_45 = arith.constant 0 : i32
      %96 = tpu.memref_slice %arg3[%95, %c0_i32_45] : memref<32x128xf32, #tpu.memory_space<any>> -> memref<1x128xf32, #tpu.memory_space<any>>
      %c7_i32_46 = arith.constant 7 : i32
      %c0_i32_47 = arith.constant 0 : i32
      %97 = tpu.memref_slice %arg6[%33, %c7_i32_46, %c0_i32_47] : memref<2x8x128xf32, #tpu.memory_space<vmem>> -> memref<1x1x128xf32, #tpu.memory_space<vmem>>
      %98 = tpu.memref_squeeze %97 : memref<1x1x128xf32, #tpu.memory_space<vmem>> -> memref<1x128xf32, #tpu.memory_space<vmem>>
      %99 = tpu.memref_slice %arg7[%33] : memref<2x!tpu.dma_semaphore, #tpu.memory_space<semaphore_mem>> -> memref<1x!tpu.dma_semaphore, #tpu.memory_space<semaphore_mem>>
      %100 = tpu.memref_squeeze %99 : memref<1x!tpu.dma_semaphore, #tpu.memory_space<semaphore_mem>> -> memref<!tpu.dma_semaphore, #tpu.memory_space<semaphore_mem>>
      tpu.enqueue_dma source(%96 : memref<1x128xf32, #tpu.memory_space<any>>) target(%98 : memref<1x128xf32, #tpu.memory_space<vmem>>) target_semaphore(%100 : memref<!tpu.dma_semaphore, #tpu.memory_space<semaphore_mem>>)
    } else {
    }
    %c0_i32_8 = arith.constant 0 : i32
    %c0_i32_9 = arith.constant 0 : i32
    %17 = tpu.memref_slice %arg3[%c0_i32_8, %c0_i32_9] : memref<32x128xf32, #tpu.memory_space<any>> -> memref<8x128xf32, #tpu.memory_space<any>>
    %c0_i32_10 = arith.constant 0 : i32
    %c0_i32_11 = arith.constant 0 : i32
    %18 = tpu.memref_slice %arg6[%9, %c0_i32_10, %c0_i32_11] : memref<2x8x128xf32, #tpu.memory_space<vmem>> -> memref<1x8x128xf32, #tpu.memory_space<vmem>>
    %19 = tpu.memref_squeeze %18 : memref<1x8x128xf32, #tpu.memory_space<vmem>> -> memref<8x128xf32, #tpu.memory_space<vmem>>
    %20 = tpu.memref_slice %arg7[%9] : memref<2x!tpu.dma_semaphore, #tpu.memory_space<semaphore_mem>> -> memref<1x!tpu.dma_semaphore, #tpu.memory_space<semaphore_mem>>
    %21 = tpu.memref_squeeze %20 : memref<1x!tpu.dma_semaphore, #tpu.memory_space<semaphore_mem>> -> memref<!tpu.dma_semaphore, #tpu.memory_space<semaphore_mem>>
    tpu.wait_dma2 semaphore(%21 : memref<!tpu.dma_semaphore, #tpu.memory_space<semaphore_mem>>) src(%17 : memref<8x128xf32, #tpu.memory_space<any>>) dst(%19 : memref<8x128xf32, #tpu.memory_space<vmem>>)
    %22 = arith.index_cast %9 : i32 to index
    %c0 = arith.constant 0 : index
    %c0_12 = arith.constant 0 : index
    %23 = vector.load %arg6[%22, %c0, %c0_12] : memref<2x8x128xf32, #tpu.memory_space<vmem>>, vector<1x8x128xf32>
    %24 = vector.shape_cast %23 : vector<1x8x128xf32> to vector<8x128xf32>
    %cst = arith.constant 11.3137083 : f32
    %25 = vector.broadcast %cst : f32 to vector<8x128xf32>
    %26 = arith.mulf %24, %25 : vector<8x128xf32>
    %c0_13 = arith.constant 0 : index
    %c0_14 = arith.constant 0 : index
    %27 = vector.load %arg4[%c0_13, %c0_14] : memref<8x128xf32, #tpu.memory_space<vmem>>, vector<8x128xf32>
    %28 = arith.addf %26, %27 : vector<8x128xf32>
    %c0_15 = arith.constant 0 : index
    %c0_16 = arith.constant 0 : index
    %c0_17 = arith.constant 0 : index
    %29 = vector.load %arg5[%c0_15, %c0_16, %c0_17] : memref<1x8x128xf32, #tpu.memory_space<vmem>>, vector<1x8x128xf32>
    %30 = vector.shape_cast %29 : vector<1x8x128xf32> to vector<8x128xf32>
    %31 = vector.shape_cast %28 : vector<8x128xf32> to vector<1x8x128xf32>
    tpu.vector_store %arg5[%c0_15, %c0_16, %c0_17], %31 {strides = array<i32>} : memref<1x8x128xf32, #tpu.memory_space<vmem>>, vector<1x8x128xf32>,
    return
  }
  func.func @transform_1(%arg0: i32, %arg1: i32, %arg2: memref<16xi32, #tpu.memory_space<smem>>) -> (i32, i32) {
    %c0_i32 = arith.constant 0 : i32
    %c0_i32_0 = arith.constant 0 : i32
    return %arg0, %c0_i32 : i32, i32
  }
  func.func @transform_2(%arg0: i32, %arg1: i32, %arg2: memref<16xi32, #tpu.memory_space<smem>>) -> (i32, i32, i32) {
    %c0_i32 = arith.constant 0 : i32
    %c0_i32_0 = arith.constant 0 : i32
    return %arg1, %arg0, %c0_i32 : i32, i32, i32
  }
}

</mosaic_0001>

<bundles_post_ra>
// kernel: tpu_custom_call.1
= control target key start
LH: loop header
LB: loop body
LE: loop exit
PB: predicated region body
PF: predicated region fallthrough
CT: control target
= control target key end

     0   :  { %s2105_s0 = inlined_call_operand.hbm [shape: s32[16], index: 0, kind: input, shape index: {}]   ;;  %s2106_s1 = inlined_call_operand.hbm [shape: f32[32,128], index: 1, kind: input, shape index: {}]   ;;  %s2107_s2 = inlined_call_operand.hbm [shape: f32[64,128], index: 2, kind: input, shape index: {}]   ;;  %s2108_s3 = inlined_call_operand.hbm [shape: f32[2,8,128], index: 3, kind: output, shape index: {}]  }
   0x1   :  { %2125 = sst [smem:[#allocation71_spill]] %s2107_s2  ;;  %s801_s14 = scalar_lea.hbm %s2105_s0, 16 }
   0x2   :  { %2126 = sst [smem:[#allocation72_spill]] %s2108_s3  ;;  %p802_p0 = scmp.ne.s32.totalorder %s2105_s0, %s801_s14 }
   0x3   :  { %p805_p1 = scmp.lt.u32.totalorder %s801_s14, %s2105_s0 }
   0x5   :  { %p807_p2 = pnand %p805_p1, %p802_p0 }
   0x7   :  { %810 = shalt.err (!%p807_p2)  }
   0x8   :  { %s1375_s19 = smov [#allocation5]  }
   0x9   :  { %9 = dma.hbm_to_smem %s2105_s0, 16, %s1375_s19, [#allocation4] }
   0xa   :  { %1339 = dma.done.wait [#allocation4], 16 }
   0xb   :  { %1340 = vsyncadd [#allocation4], 4294967280 }
   0xc   :  { %11 = sfence }
   0xd   :  { %12 = vsyncpa [#allocation7], 0 }
   0xe   :  { %13 = vsyncpa [#allocation8], 0 }
   0xf   :  { %15 = vsyncpa [#allocation8 + $0x1], 0  ;;  %s1411_s22 = smov 0   ;;  %s1413_s23 = smov 0  }
  0x10   :  { %s1415_s24 = smov 0   ;;  %s1417_s25 = smov 0  }
  0x11   :  { %s1419_s26 = smov 0   ;;  %s1421_s27 = smov 0  }
  0x12 LB: > { %2127 = sst [smem:[#allocation64_spill]] %s1353_s22  ;;  %s627_s0 = sadd.s32 4294967295, %s1373_s27   ;;  %s1373_s27 = sphi %s1421_s27, %s21_s27   ;;  %s1369_s26 = sphi %s1419_s26, %s2156_s26   ;;  %s1365_s25 = sphi %s1417_s25, %s2155_s25   ;;  %s1361_s24 = sphi %s1415_s24, %s2154_s24   ;;  %s1357_s23 = sphi %s1413_s23, %s2158_s23   ;;  %s1353_s22 = sphi %s1411_s22, %s2157_s22  }
  0x13   : > { %2128 = sst [smem:[#allocation65_spill]] %s1361_s24  ;;  %s628_s28 = sadd.s32 4294967294, %s1373_s27  }
  0x14   : > { %2129 = sst [smem:[#allocation66_spill]] %s1369_s26  ;;  %s30_s29 = sadd.s32 1, %s1369_s26 }
  0x15   : > { %2130 = sst [smem:[#allocation67_spill]] %s1373_s27  ;;  %s68_s30 = sadd.s32 1, %s1361_s24 }
  0x16   : > { %p31_p3 = scmp.ge.s32.totalorder %s30_s29, 2  ;;  %p78_p4 = scmp.ne.s32.totalorder %s1361_s24, %s1357_s23 }
  0x17   : > { %p79_p5 = scmp.eq.s32.totalorder %s627_s0, 1  ;;  %p84_p6 = scmp.ne.s32.totalorder %s1357_s23, %s1353_s22 }
  0x18   : > { %s2160_s29 = smov (%p31_p3, %s30_s29), 0  ;;  %p85_p8 = scmp.eq.s32.totalorder %s628_s28, 1 }
  0x19   : > { %2131 = sst [smem:[#allocation68_spill]] %s2160_s29  ;;  %p1451_p7 = por %p79_p5, %p78_p4 }
  0x1a   : > { %s63_s5 = ssub.s32 %s1369_s26, %s2160_s29  ;;  %p629_p9 = scmp.ge.s32.totalorder %s1373_s27, 1 }
  0x1b   : > { %s2132_s4 = scalar_select %p1451_p7, 1, 0 }
  0x1c   : > { %p66_p10 = scmp.eq.s32.totalorder %s63_s5, 0  ;;  %p1458_p11 = por %p85_p8, %p84_p6 }
  0x1d   : > { %p92_p12 = scmp.lt.s32.totalorder %s1373_s27, 3  ;;  %p1470_p0 = scmp.eq.s32.totalorder %s627_s0, 0 }
  0x1e   : > { %s2133_s6 = scalar_select %p1458_p11, 1, 0 }
  0x1f   : > { %s1464_s7 = scalar_select %p66_p10, %s1361_s24, %s68_s30  }
  0x20   : > { %2134 = sst [smem:[#allocation69_spill]] %s2133_s6  ;;  %p1466_p13 = pnand %p629_p9, %p92_p12 }
  0x21   : > { %2135 = sst [smem:[#allocation70_spill]] %s1464_s7  ;;  %s1376_s10 = smov [#allocation6]  }
  0x22   : > { %s2136_s8 = scalar_select %p1466_p13, 1, 0 }
  0x23   : > { %s2137_s9 = scalar_select %p1470_p0, 1, 0 }
  0x24   : > { %p738_p1 = pneg %p1466_p13  ;;  %s107_s11 = sshll.u32 %s1376_s10, 4  ;;  %s108_s11 = int_to_ptr.vmem [resolvable:$true] %s107_s11 }
  0x25   : > { %s2139_s2 = sld [smem:[#allocation71_spill]] }
  0x26   : > { %p1478_p2 = pnand %p1470_p0, %p738_p1 }
  0x28   : > { %p813_p4 = pneg %p1478_p2 }
  0x2b   : > { %s811_s15 = scalar_lea.hbm %s2139_s2, 128  ;;  %s816_s20 = scalar_lea.hbm %s2139_s2, 1024 }
  0x2c   : > { %p812_p3 = scmp.ne.s32.totalorder %s2139_s2, %s811_s15  ;;  %p817_p8 = scmp.lt.u32.totalorder %s816_s20, %s811_s15 }
  0x2d   : > { %p818_p9 = scmp.lt.u32.totalorder %s811_s15, %s2139_s2 }
  0x2e   : > { %p814_p5 = pnand %p813_p4, %p812_p3 }
  0x2f   : > { %p819_p10 = por %p818_p9, %p817_p8 }
  0x30   : > { %p815_p6 = pneg %p814_p5 }
  0x32   : > { %p820_p12 = pnand %p819_p10, %p815_p6 }
  0x34   : > { %823 = shalt.err (!%p820_p12)
}
  0x35   : > { %s824_s28 = scalar_lea.vmem %s108_s11, 128  ;;  %p832_p0 = scmp.lt.s32.totalorder %s108_s11, %s108_s11 }
  0x36   : > { %p825_p1 = scmp.ne.s32.totalorder %s108_s11, %s824_s28  ;;  %p833_p13 = scmp.lt.s32.totalorder %s824_s28, %s824_s28 }
  0x38   : > { %p827_p11 = pnand %p825_p1, %p813_p4  ;;  %p834_p3 = por %p833_p13, %p832_p0 }
  0x3a   : > { %p828_p7 = pneg %p827_p11 }
  0x3c   : > { %p835_p5 = pnand %p834_p3, %p828_p7 }
  0x3e   : > { %838 = shalt.err (!%p835_p5)
}
  0x3f   : > { %741 = dma.hbm_to_vmem [thread:$0]  (!%p1478_p2), %s2139_s2, 128, %s108_s11, [#allocation7]  }
  0x40   : > { %p2140_p8 = scmp.ne.s32.totalorder %s2136_s8, 0 }
  0x41   : > { %p2141_p6 = scmp.ne.s32.totalorder (!%p2140_p8), %s2137_s9, 0 }
  0x42   : > { %120 = sbr.rel (%p2140_p8) target bundleno = 535 (0x217), region = 24 }
  0x49   : > { %1342 = dma.done.wait (%p2141_p6), [#allocation7], 128  }
  0x4a   : > { %1344 = vsyncadd (%p2141_p6), [#allocation7], 4294967168  ;;  %s2113_s10 = sand.u32 1, %s1357_s23   ;;  %p135_p7 = scmp.lt.s32.totalorder %s1365_s25, 0 }
  0x4b   : > { %s1511_s8 = sshll.u32 %s2113_s10, 3  ;;  %s136_s11 = ssub.s32 0, %s1365_s25 }
  0x4c   : > { %s634_s12 = smin.u32 %s1365_s25, %s136_s11  ;;  %p748_p11 = scmp.eq.s32.totalorder %s1365_s25, 0 }
  0x4d   : > { %s138_s13 = sand.u32 1, %s634_s12   ;;  %s1517_s14 = sshll.u32 %s1365_s25, 3 }
  0x4e   : > { %s139_s9 = ssub.s32 0, %s138_s13  ;;  %s171_s28 = sadd.s32 1, %s1517_s14 }
  0x4f   : > { %s2162_s9 = smov (!%p135_p7, %s139_s9), %s138_s13  ;;  %s2166_s28 = smov (!%p748_p11, %s171_s28), 0 }
  0x50   : > { %p636_p13 = scmp.lt.s32.totalorder %s2162_s9, 0  ;;  %s145_s16 = sadd.s32 2, %s2162_s9 }
  0x51   : > { %s687_s17 = scalar_select %p748_p11, [#allocation5], [#allocation44] }
  0x52   : > { %s2164_s16 = smov (!%p636_p13, %s145_s16), %s2162_s9  ;;  %s188_s12 = sadd.s32 2, %s1517_s14 }
  0x53   : > { %s688_s18 = scalar_select %p748_p11, %s1517_s14, 0 }
  0x54   : > { %s640_s19 = sshll.u32 %s2164_s16, 3  ;;  %s1550_s10 = scalar_lea.sflag [#allocation3], %s2164_s16 }
  0x55   : > { %s154_s20 = sld [smem:[%s687_s17 + %s688_s18]]  ;;  %s1528_s21 = scalar_lea.vmem [#allocation2], %s640_s19 }
  0x56   : > { %s167_s0 = sshll.u32 %s1528_s21, 4  ;;  %s512_s30 = scalar_lea.vmem %s1528_s21, 1 [#allocation2]  ;;  %s1532_s0 = int_to_ptr.vmem [resolvable:$true] %s167_s0 }
  0x57   : > { %s690_s5 = scalar_select %p748_p11, [#allocation5], [#allocation45] }
  0x58   : > { %s184_s11 = sshll.u32 %s512_s30, 4  ;;  %s1559_s30 = scalar_lea.hbm %s2106_s1, 512  ;;  %s1547_s11 = int_to_ptr.vmem [resolvable:$true] %s184_s11 }
  0x59   : > { %s1540_s9 = sld [smem:[%s690_s5 + %s2166_s28]] }
  0x5b   : > { %s639_s13 = sshll.u32 %s154_s20, 4 }
  0x5c   : > { %s1545_s19 = scalar_lea.hbm %s2106_s1, %s639_s13 }
  0x5d   : > { %s839_s15 = scalar_lea.hbm %s1545_s19, 16  ;;  %p844_p9 = scmp.lt.u32.totalorder %s1545_s19, %s2106_s1 }
  0x5e   : > { %p840_p0 = scmp.ne.s32.totalorder %s1545_s19, %s839_s15  ;;  %p845_p10 = scmp.lt.u32.totalorder %s1559_s30, %s839_s15 }
  0x5f   : > { %p847_p1 = scmp.lt.u32.totalorder %s839_s15, %s1545_s19 }
  0x60   : > { %p841_p2 = pnand %p840_p0, %p748_p11  ;;  %p846_p12 = por %p845_p10, %p844_p9 }
  0x62   : > { %p842_p4 = pneg %p841_p2  ;;  %p848_p3 = por %p847_p1, %p846_p12 }
  0x64   : > { %p849_p5 = pnand %p848_p3, %p842_p4 }
  0x66   : > { %852 = shalt.err (!%p849_p5)  }
  0x67   : > { %s853_s17 = scalar_lea.vmem %s1532_s0, 16  ;;  %s1377_s18 = smov [#allocation2]  }
  0x68   : > { %p854_p8 = scmp.ne.s32.totalorder %s1532_s0, %s853_s17  ;;  %s857_s20 = sshll.u32 %s1377_s18, 4  ;;  %s1571_s20 = int_to_ptr.vmem [resolvable:$false] %s857_s20 }
  0x69   : > { %s1574_s28 = scalar_lea.vmem %s1571_s20, 256  ;;  %p860_p13 = scmp.lt.s32.totalorder %s1532_s0, %s1571_s20 }
  0x6a   : > { %p855_p6 = pnand %p854_p8, %p748_p11  ;;  %p861_p0 = scmp.lt.s32.totalorder %s1574_s28, %s853_s17 }
  0x6c   : > { %p856_p7 = pneg %p855_p6  ;;  %p862_p2 = por %p861_p0, %p860_p13 }
  0x6e   : > { %p863_p4 = pnand %p862_p2, %p856_p7 }
  0x70   : > { %866 = shalt.err (!%p863_p4)  }
  0x71   : > { %689 = dma.hbm_to_vmem [thread:$0]  (%p748_p11), %s1545_s19, 16, %s1532_s0, %s1550_s10 }
  0x72   : > { %s693_s15 = scalar_select %p748_p11, [#allocation5], [#allocation46] }
  0x73   : > { %s2168_s12 = smov (!%p748_p11, %s188_s12), 0  ;;  %s517_s5 = scalar_lea.vmem %s1528_s21, 2 [#allocation2] }
  0x74   : > { %s205_s13 = sadd.s32 3, %s1517_s14  ;;  %s641_s17 = sshll.u32 %s1540_s9, 4 }
  0x75   : > { %s1593_s18 = sld [smem:[%s693_s15 + %s2168_s12]]  ;;  %s174_s26 = scalar_lea.hbm %s2106_s1, %s641_s17 }
  0x76   : > { %s201_s7 = sshll.u32 %s517_s5, 4  ;;  %s867_s24 = scalar_lea.hbm %s174_s26, 16  ;;  %s1615_s7 = int_to_ptr.vmem [resolvable:$true] %s201_s7 }
  0x77   : > { %p868_p9 = scmp.ne.s32.totalorder %s174_s26, %s867_s24  ;;  %p872_p1 = scmp.lt.u32.totalorder %s174_s26, %s2106_s1 }
  0x78   : > { %p873_p3 = scmp.lt.u32.totalorder %s1559_s30, %s867_s24  ;;  %p875_p8 = scmp.lt.u32.totalorder %s867_s24, %s174_s26 }
  0x79   : > { %p869_p10 = pnand %p868_p9, %p748_p11 }
  0x7a   : > { %p874_p5 = por %p873_p3, %p872_p1 }
  0x7b   : > { %p870_p12 = pneg %p869_p10 }
  0x7c   : > { %p876_p6 = por %p875_p8, %p874_p5 }
  0x7e   : > { %p877_p7 = pnand %p876_p6, %p870_p12 }
  0x80   : > { %880 = shalt.err (!%p877_p7)  }
  0x81   : > { %s881_s2 = scalar_lea.vmem %s1547_s11, 16  ;;  %p888_p4 = scmp.lt.s32.totalorder %s1547_s11, %s1571_s20 }
  0x82   : > { %p882_p13 = scmp.ne.s32.totalorder %s1547_s11, %s881_s2  ;;  %p889_p9 = scmp.lt.s32.totalorder %s1574_s28, %s881_s2 }
  0x84   : > { %p883_p0 = pnand %p882_p13, %p748_p11  ;;  %p890_p10 = por %p889_p9, %p888_p4 }
  0x86   : > { %p884_p2 = pneg %p883_p0 }
  0x88   : > { %p891_p1 = pnand %p890_p10, %p884_p2 }
  0x8a   : > { %894 = shalt.err (!%p891_p1)  }
  0x8b   : > { %692 = dma.hbm_to_vmem [thread:$0]  (%p748_p11), %s174_s26, 16, %s1547_s11, %s1550_s10 }
  0x8c   : > { %s522_s24 = scalar_lea.vmem %s1528_s21, 3 [#allocation2]  ;;  %s2170_s13 = smov (!%p748_p11, %s205_s13), 0 }
  0x8d   : > { %s696_s29 = scalar_select %p748_p11, [#allocation5], [#allocation47] }
  0x8e   : > { %s643_s12 = sshll.u32 %s1593_s18, 4  ;;  %s218_s9 = sshll.u32 %s522_s24, 4  ;;  %s1645_s9 = int_to_ptr.vmem [resolvable:$true] %s218_s9 }
  0x8f   : > { %s191_s17 = scalar_lea.hbm %s2106_s1, %s643_s12  ;;  %s1626_s0 = sld [smem:[%s696_s29 + %s2170_s13]] }
  0x90   : > { %s895_s19 = scalar_lea.hbm %s191_s17, 16  ;;  %p900_p8 = scmp.lt.u32.totalorder %s191_s17, %s2106_s1 }
  0x91   : > { %p896_p12 = scmp.ne.s32.totalorder %s191_s17, %s895_s19  ;;  %p901_p6 = scmp.lt.u32.totalorder %s1559_s30, %s895_s19 }
  0x92   : > { %p903_p13 = scmp.lt.u32.totalorder %s895_s19, %s191_s17 }
  0x93   : > { %p897_p3 = pnand %p896_p12, %p748_p11  ;;  %p902_p7 = por %p901_p6, %p900_p8 }
  0x95   : > { %p898_p5 = pneg %p897_p3  ;;  %p904_p0 = por %p903_p13, %p902_p7 }
  0x97   : > { %p905_p2 = pnand %p904_p0, %p898_p5 }
  0x99   : > { %908 = shalt.err (!%p905_p2)  }
  0x9a   : > { %s909_s13 = scalar_lea.vmem %s1615_s7, 16  ;;  %p916_p1 = scmp.lt.s32.totalorder %s1615_s7, %s1571_s20 }
  0x9b   : > { %p910_p4 = scmp.ne.s32.totalorder %s1615_s7, %s909_s13  ;;  %p917_p12 = scmp.lt.s32.totalorder %s1574_s28, %s909_s13 }
  0x9d   : > { %p911_p9 = pnand %p910_p4, %p748_p11  ;;  %p918_p3 = por %p917_p12, %p916_p1 }
  0x9f   : > { %p912_p10 = pneg %p911_p9 }
  0xa1   : > { %p919_p6 = pnand %p918_p3, %p912_p10 }
  0xa3   : > { %922 = shalt.err (!%p919_p6)  }
  0xa4   : > { %695 = dma.hbm_to_vmem [thread:$0]  (%p748_p11), %s191_s17, 16, %s1615_s7, %s1550_s10 }
  0xa5   : > { %s222_s18 = sadd.s32 4, %s1517_s14  ;;  %s527_s24 = scalar_lea.vmem %s1528_s21, 4 [#allocation2] }
  0xa6   : > { %s699_s2 = scalar_select %p748_p11, [#allocation5], [#allocation48] }
  0xa7   : > { %s2172_s18 = smov (!%p748_p11, %s222_s18), 0  ;;  %s239_s29 = sadd.s32 5, %s1517_s14 }
  0xa8   : > { %s645_s12 = sshll.u32 %s1626_s0, 4  ;;  %s1655_s15 = sld [smem:[%s699_s2 + %s2172_s18]] }
  0xa9   : > { %s208_s26 = scalar_lea.hbm %s2106_s1, %s645_s12  ;;  %s235_s11 = sshll.u32 %s527_s24, 4  ;;  %s1677_s11 = int_to_ptr.vmem [resolvable:$true] %s235_s11 }
  0xaa   : > { %s923_s13 = scalar_lea.hbm %s208_s26, 16  ;;  %p928_p13 = scmp.lt.u32.totalorder %s208_s26, %s2106_s1 }
  0xab   : > { %p924_p5 = scmp.ne.s32.totalorder %s208_s26, %s923_s13  ;;  %p929_p0 = scmp.lt.u32.totalorder %s1559_s30, %s923_s13 }
  0xac   : > { %p931_p4 = scmp.lt.u32.totalorder %s923_s13, %s208_s26 }
  0xad   : > { %p925_p8 = pnand %p924_p5, %p748_p11  ;;  %p930_p2 = por %p929_p0, %p928_p13 }
  0xaf   : > { %p926_p7 = pneg %p925_p8  ;;  %p932_p9 = por %p931_p4, %p930_p2 }
  0xb1   : > { %p933_p10 = pnand %p932_p9, %p926_p7 }
  0xb3   : > { %936 = shalt.err (!%p933_p10)  }
  0xb4   : > { %s937_s0 = scalar_lea.vmem %s1645_s9, 16  ;;  %p944_p6 = scmp.lt.s32.totalorder %s1645_s9, %s1571_s20 }
  0xb5   : > { %p938_p1 = scmp.ne.s32.totalorder %s1645_s9, %s937_s0  ;;  %p945_p5 = scmp.lt.s32.totalorder %s1574_s28, %s937_s0 }
  0xb7   : > { %p939_p12 = pnand %p938_p1, %p748_p11  ;;  %p946_p8 = por %p945_p5, %p944_p6 }
  0xb9   : > { %p940_p3 = pneg %p939_p12 }
  0xbb   : > { %p947_p0 = pnand %p946_p8, %p940_p3 }
  0xbd   : > { %950 = shalt.err (!%p947_p0)  }
  0xbe   : > { %698 = dma.hbm_to_vmem [thread:$0]  (%p748_p11), %s208_s26, 16, %s1645_s9, %s1550_s10 }
  0xbf   : > { %s532_s18 = scalar_lea.vmem %s1528_s21, 5 [#allocation2]  ;;  %s2174_s29 = smov (!%p748_p11, %s239_s29), 0 }
  0xc0   : > { %s702_s2 = scalar_select %p748_p11, [#allocation5], [#allocation49] }
  0xc1   : > { %s647_s24 = sshll.u32 %s1655_s15, 4  ;;  %s252_s12 = sshll.u32 %s532_s18, 4  ;;  %s1707_s12 = int_to_ptr.vmem [resolvable:$true] %s252_s12 }
  0xc2   : > { %s225_s13 = scalar_lea.hbm %s2106_s1, %s647_s24  ;;  %s1688_s7 = sld [smem:[%s702_s2 + %s2174_s29]] }
  0xc3   : > { %s951_s17 = scalar_lea.hbm %s225_s13, 16  ;;  %p956_p4 = scmp.lt.u32.totalorder %s225_s13, %s2106_s1 }
  0xc4   : > { %p952_p7 = scmp.ne.s32.totalorder %s225_s13, %s951_s17  ;;  %p957_p9 = scmp.lt.u32.totalorder %s1559_s30, %s951_s17 }
  0xc5   : > { %p959_p1 = scmp.lt.u32.totalorder %s951_s17, %s225_s13 }
  0xc6   : > { %p953_p13 = pnand %p952_p7, %p748_p11  ;;  %p958_p10 = por %p957_p9, %p956_p4 }
  0xc8   : > { %p954_p2 = pneg %p953_p13  ;;  %p960_p12 = por %p959_p1, %p958_p10 }
  0xca   : > { %p961_p3 = pnand %p960_p12, %p954_p2 }
  0xcc   : > { %964 = shalt.err (!%p961_p3)  }
  0xcd   : > { %s965_s29 = scalar_lea.vmem %s1677_s11, 16  ;;  %p972_p0 = scmp.lt.s32.totalorder %s1677_s11, %s1571_s20 }
  0xce   : > { %p966_p6 = scmp.ne.s32.totalorder %s1677_s11, %s965_s29  ;;  %p973_p7 = scmp.lt.s32.totalorder %s1574_s28, %s965_s29 }
  0xd0   : > { %p967_p5 = pnand %p966_p6, %p748_p11  ;;  %p974_p13 = por %p973_p7, %p972_p0 }
  0xd2   : > { %p968_p8 = pneg %p967_p5 }
  0xd4   : > { %p975_p4 = pnand %p974_p13, %p968_p8 }
  0xd6   : > { %978 = shalt.err (!%p975_p4)  }
  0xd7   : > { %701 = dma.hbm_to_vmem [thread:$0]  (%p748_p11), %s225_s13, 16, %s1677_s11, %s1550_s10 }
  0xd8   : > { %s256_s15 = sadd.s32 6, %s1517_s14  ;;  %s537_s18 = scalar_lea.vmem %s1528_s21, 6 [#allocation2] }
  0xd9   : > { %s705_s0 = scalar_select %p748_p11, [#allocation5], [#allocation50] }
  0xda   : > { %s2176_s15 = smov (!%p748_p11, %s256_s15), 0  ;;  %s273_s2 = sadd.s32 7, %s1517_s14 }
  0xdb   : > { %s649_s24 = sshll.u32 %s1688_s7, 4  ;;  %s1717_s5 = sld [smem:[%s705_s0 + %s2176_s15]] }
  0xdc   : > { %s242_s9 = scalar_lea.hbm %s2106_s1, %s649_s24  ;;  %s269_s26 = sshll.u32 %s537_s18, 4  ;;  %s1739_s26 = int_to_ptr.vmem [resolvable:$true] %s269_s26 }
  0xdd   : > { %s979_s29 = scalar_lea.hbm %s242_s9, 16  ;;  %p984_p1 = scmp.lt.u32.totalorder %s242_s9, %s2106_s1 }
  0xde   : > { %p980_p2 = scmp.ne.s32.totalorder %s242_s9, %s979_s29  ;;  %p985_p12 = scmp.lt.u32.totalorder %s1559_s30, %s979_s29 }
  0xdf   : > { %p987_p6 = scmp.lt.u32.totalorder %s979_s29, %s242_s9 }
  0xe0   : > { %p981_p9 = pnand %p980_p2, %p748_p11  ;;  %p986_p3 = por %p985_p12, %p984_p1 }
  0xe2   : > { %p982_p10 = pneg %p981_p9  ;;  %p988_p5 = por %p987_p6, %p986_p3 }
  0xe4   : > { %p989_p8 = pnand %p988_p5, %p982_p10 }
  0xe6   : > { %992 = shalt.err (!%p989_p8)  }
  0xe7   : > { %s993_s7 = scalar_lea.vmem %s1707_s12, 16  ;;  %p1000_p4 = scmp.lt.s32.totalorder %s1707_s12, %s1571_s20 }
  0xe8   : > { %p994_p0 = scmp.ne.s32.totalorder %s1707_s12, %s993_s7  ;;  %p1001_p2 = scmp.lt.s32.totalorder %s1574_s28, %s993_s7 }
  0xea   : > { %p995_p7 = pnand %p994_p0, %p748_p11  ;;  %p1002_p9 = por %p1001_p2, %p1000_p4 }
  0xec   : > { %p996_p13 = pneg %p995_p7 }
  0xee   : > { %p1003_p1 = pnand %p1002_p9, %p996_p13 }
  0xf0   : > { %1006 = shalt.err (!%p1003_p1)  }
  0xf1   : > { %704 = dma.hbm_to_vmem [thread:$0]  (%p748_p11), %s242_s9, 16, %s1707_s12, %s1550_s10 }
  0xf2   : > { %s542_s15 = scalar_lea.vmem %s1528_s21, 7 [#allocation2]  ;;  %s2178_s2 = smov (!%p748_p11, %s273_s2), 0 }
  0xf3   : > { %s708_s0 = scalar_select %p748_p11, [#allocation5], [#allocation51] }
  0xf4   : > { %s651_s18 = sshll.u32 %s1717_s5, 4  ;;  %s286_s24 = sshll.u32 %s542_s15, 4  ;;  %s1769_s24 = int_to_ptr.vmem [resolvable:$true] %s286_s24 }
  0xf5   : > { %s259_s29 = scalar_lea.hbm %s2106_s1, %s651_s18  ;;  %s1750_s11 = sld [smem:[%s708_s0 + %s2178_s2]] }
  0xf6   : > { %s1007_s13 = scalar_lea.hbm %s259_s29, 16  ;;  %p1012_p6 = scmp.lt.u32.totalorder %s259_s29, %s2106_s1 }
  0xf7   : > { %p1008_p10 = scmp.ne.s32.totalorder %s259_s29, %s1007_s13  ;;  %p1013_p5 = scmp.lt.u32.totalorder %s1559_s30, %s1007_s13 }
  0xf8   : > { %p1015_p0 = scmp.lt.u32.totalorder %s1007_s13, %s259_s29 }
  0xf9   : > { %p1009_p12 = pnand %p1008_p10, %p748_p11  ;;  %p1014_p8 = por %p1013_p5, %p1012_p6 }
  0xfb   : > { %p1010_p3 = pneg %p1009_p12  ;;  %p1016_p7 = por %p1015_p0, %p1014_p8 }
  0xfd   : > { %p1017_p13 = pnand %p1016_p7, %p1010_p3 }
  0xff   : > { %1020 = shalt.err (!%p1017_p13)  }
 0x100   : > { %s1021_s2 = scalar_lea.vmem %s1739_s26, 16  ;;  %p1028_p1 = scmp.lt.s32.totalorder %s1739_s26, %s1571_s20 }
 0x101   : > { %p1022_p4 = scmp.ne.s32.totalorder %s1739_s26, %s1021_s2  ;;  %p1029_p10 = scmp.lt.s32.totalorder %s1574_s28, %s1021_s2 }
 0x103   : > { %p1023_p2 = pnand %p1022_p4, %p748_p11  ;;  %p1030_p12 = por %p1029_p10, %p1028_p1 }
 0x105   : > { %p1024_p9 = pneg %p1023_p2 }
 0x107   : > { %p1031_p5 = pnand %p1030_p12, %p1024_p9 }
 0x109   : > { %1034 = shalt.err (!%p1031_p5)  }
 0x10a   : > { %707 = dma.hbm_to_vmem [thread:$0]  (%p748_p11), %s259_s29, 16, %s1739_s26, %s1550_s10 }
 0x10b   : > { %s2142_s5 = sadd.s32 1, %s1365_s25  ;;  %s2119_s15 = ssub.s32 1, %s2164_s16 }
 0x10c   : > { %p1773_p3 = scmp.lt.s32.totalorder %s2142_s5, 2  ;;  %s1779_s0 = sadd.s32 8, %s1517_s14 }
 0x10d   : > { %s658_s18 = sshll.u32 %s2119_s15, 3  ;;  %s653_s17 = sshll.u32 %s1750_s11, 4 }
 0x10e   : > { %s2143_s7 = scalar_select %p1773_p3, 1, 0 }
 0x10f   : > { %s712_s19 = scalar_select %p1773_p3, [#allocation5], [#allocation52] }
 0x110   : > { %s276_s26 = scalar_lea.hbm %s2106_s1, %s653_s17 }
 0x111   : > { %s1035_s29 = scalar_lea.hbm %s276_s26, 16  ;;  %p1040_p7 = scmp.lt.u32.totalorder %s276_s26, %s2106_s1 }
 0x112   : > { %p1036_p6 = scmp.ne.s32.totalorder %s276_s26, %s1035_s29  ;;  %p1041_p13 = scmp.lt.u32.totalorder %s1559_s30, %s1035_s29 }
 0x113   : > { %p1043_p2 = scmp.lt.u32.totalorder %s1035_s29, %s276_s26 }
 0x114   : > { %p1037_p8 = pnand %p1036_p6, %p748_p11  ;;  %p1042_p4 = por %p1041_p13, %p1040_p7 }
 0x116   : > { %p1038_p0 = pneg %p1037_p8  ;;  %p1044_p9 = por %p1043_p2, %p1042_p4 }
 0x118   : > { %p1045_p1 = pnand %p1044_p9, %p1038_p0 }
 0x11a   : > { %1048 = shalt.err (!%p1045_p1)  }
 0x11b   : > { %s1049_s14 = scalar_lea.vmem %s1769_s24, 16  ;;  %p1056_p6 = scmp.lt.s32.totalorder %s1769_s24, %s1571_s20 }
 0x11c   : > { %p1050_p10 = scmp.ne.s32.totalorder %s1769_s24, %s1049_s14  ;;  %p1057_p8 = scmp.lt.s32.totalorder %s1574_s28, %s1049_s14 }
 0x11e   : > { %p1051_p12 = pnand %p1050_p10, %p748_p11  ;;  %p1058_p3 = por %p1057_p8, %p1056_p6 }
 0x120   : > { %p1052_p5 = pneg %p1051_p12 }
 0x122   : > { %p1059_p7 = pnand %p1058_p3, %p1052_p5 }
 0x124   : > { %1062 = shalt.err (!%p1059_p7)  }
 0x125   : > { %710 = dma.hbm_to_vmem [thread:$0]  (%p748_p11), %s276_s26, 16, %s1769_s24, %s1550_s10 }
 0x126   : > { %p2144_p0 = scmp.ne.s32.totalorder %s2143_s7, 0  ;;  %s1809_s5 = scalar_lea.vmem [#allocation2], %s658_s18 }
 0x127   : > { %s312_s17 = sshll.u32 %s1809_s5, 4  ;;  %s316_s13 = sadd.s32 1, %s1779_s0  ;;  %s1813_s17 = int_to_ptr.vmem [resolvable:$true] %s312_s17 }
 0x128   : > { %s713_s11 = scalar_select %p2144_p0, %s1779_s0, 0 }
 0x129   : > { %s715_s29 = scalar_select %p2144_p0, [#allocation5], [#allocation53] }
 0x12a   : > { %s299_s12 = sld [smem:[%s712_s19 + %s713_s11]]  ;;  %s2180_s13 = smov (!%p2144_p0, %s316_s13), 0 }
 0x12b   : > { %s552_s9 = scalar_lea.vmem %s1809_s5, 1 [#allocation2]  ;;  %s333_s24 = sadd.s32 2, %s1779_s0 }
 0x12c   : > { %s1821_s26 = sld [smem:[%s715_s29 + %s2180_s13]]  ;;  %s329_s18 = sshll.u32 %s552_s9, 4  ;;  %s1823_s18 = int_to_ptr.vmem [resolvable:$true] %s329_s18 }
 0x12d   : > { %s557_s2 = scalar_lea.vmem %s1809_s5, 2 [#allocation2]  ;;  %s2145_s22 = ssub.s32 1, %s2164_s16 }
 0x12e   : > { %s346_s15 = sshll.u32 %s557_s2, 4  ;;  %s1833_s27 = scalar_lea.sflag [#allocation3], %s2145_s22  ;;  %s1829_s15 = int_to_ptr.vmem [resolvable:$true] %s346_s15 }
 0x130   : > { %s657_s14 = sshll.u32 %s299_s12, 4 }
 0x131   : > { %s301_s11 = scalar_lea.hbm %s2106_s1, %s657_s14 }
 0x132   : > { %s1063_s3 = scalar_lea.hbm %s301_s11, 16  ;;  %p1068_p4 = scmp.lt.u32.totalorder %s301_s11, %s2106_s1 }
 0x133   : > { %p1064_p11 = scmp.ne.s32.totalorder %s301_s11, %s1063_s3  ;;  %p1069_p2 = scmp.lt.u32.totalorder %s1559_s30, %s1063_s3 }
 0x134   : > { %p1071_p1 = scmp.lt.u32.totalorder %s1063_s3, %s301_s11 }
 0x135   : > { %p1065_p3 = pnand %p1064_p11, %p2144_p0  ;;  %p1070_p9 = por %p1069_p2, %p1068_p4 }
 0x137   : > { %p1066_p13 = pneg %p1065_p3  ;;  %p1072_p10 = por %p1071_p1, %p1070_p9 }
 0x139   : > { %p1073_p12 = pnand %p1072_p10, %p1066_p13 }
 0x13b   : > { %1076 = shalt.err (!%p1073_p12)  }
 0x13c   : > { %s1077_s22 = scalar_lea.vmem %s1813_s17, 16  ;;  %p1084_p7 = scmp.lt.s32.totalorder %s1813_s17, %s1571_s20 }
 0x13d   : > { %p1078_p5 = scmp.ne.s32.totalorder %s1813_s17, %s1077_s22  ;;  %p1085_p11 = scmp.lt.s32.totalorder %s1574_s28, %s1077_s22 }
 0x13f   : > { %p1079_p6 = pnand %p1078_p5, %p2144_p0  ;;  %p1086_p3 = por %p1085_p11, %p1084_p7 }
 0x141   : > { %p1080_p8 = pneg %p1079_p6 }
 0x143   : > { %p1087_p2 = pnand %p1086_p3, %p1080_p8 }
 0x145   : > { %1090 = shalt.err (!%p1087_p2)  }
 0x146   : > { %714 = dma.hbm_to_vmem [thread:$0]  (%p2144_p0), %s301_s11, 16, %s1813_s17, %s1833_s27 }
 0x147   : > { %s718_s3 = scalar_select %p2144_p0, [#allocation5], [#allocation54] }
 0x148   : > { %s659_s6 = sshll.u32 %s1821_s26, 4  ;;  %s350_s16 = sadd.s32 3, %s1779_s0 }
 0x149   : > { %s319_s2 = scalar_lea.hbm %s2106_s1, %s659_s6  ;;  %s562_s14 = scalar_lea.vmem %s1809_s5, 3 [#allocation2] }
 0x14a   : > { %s1091_s19 = scalar_lea.hbm %s319_s2, 16  ;;  %p1096_p1 = scmp.lt.u32.totalorder %s319_s2, %s2106_s1 }
 0x14b   : > { %p1092_p13 = scmp.ne.s32.totalorder %s319_s2, %s1091_s19  ;;  %p1097_p10 = scmp.lt.u32.totalorder %s1559_s30, %s1091_s19 }
 0x14c   : > { %p1099_p5 = scmp.lt.u32.totalorder %s1091_s19, %s319_s2 }
 0x14d   : > { %p1093_p4 = pnand %p1092_p13, %p2144_p0  ;;  %p1098_p12 = por %p1097_p10, %p1096_p1 }
 0x14f   : > { %p1094_p9 = pneg %p1093_p4  ;;  %p1100_p6 = por %p1099_p5, %p1098_p12 }
 0x151   : > { %p1101_p8 = pnand %p1100_p6, %p1094_p9 }
 0x153   : > { %1104 = shalt.err (!%p1101_p8)  }
 0x154   : > { %s1105_s17 = scalar_lea.vmem %s1823_s18, 16  ;;  %p1112_p2 = scmp.lt.s32.totalorder %s1823_s18, %s1571_s20 }
 0x155   : > { %p1106_p7 = scmp.ne.s32.totalorder %s1823_s18, %s1105_s17  ;;  %p1113_p13 = scmp.lt.s32.totalorder %s1574_s28, %s1105_s17 }
 0x157   : > { %p1107_p11 = pnand %p1106_p7, %p2144_p0  ;;  %p1114_p4 = por %p1113_p13, %p1112_p2 }
 0x159   : > { %p1108_p3 = pneg %p1107_p11 }
 0x15b   : > { %p1115_p1 = pnand %p1114_p4, %p1108_p3 }
 0x15d   : > { %1118 = shalt.err (!%p1115_p1)  }
 0x15e   : > { %717 = dma.hbm_to_vmem [thread:$0]  (%p2144_p0), %s319_s2, 16, %s1823_s18, %s1833_s27 }
 0x15f   : > { %s2182_s24 = smov (!%p2144_p0, %s333_s24), 0  ;;  %s363_s22 = sshll.u32 %s562_s14, 4  ;;  %s1885_s22 = int_to_ptr.vmem [resolvable:$true] %s363_s22 }
 0x160   : > { %s721_s26 = scalar_select %p2144_p0, [#allocation5], [#allocation55] }
 0x161   : > { %s334_s11 = sld [smem:[%s718_s3 + %s2182_s24]]  ;;  %s2184_s16 = smov (!%p2144_p0, %s350_s16), 0 }
 0x162   : > { %s367_s6 = sadd.s32 4, %s1779_s0  ;;  %s1888_s12 = sld [smem:[%s721_s26 + %s2184_s16]] }
 0x163   : > { %s567_s9 = scalar_lea.vmem %s1809_s5, 4 [#allocation2]  ;;  %s2186_s6 = smov (!%p2144_p0, %s367_s6), 0 }
 0x164   : > { %s724_s19 = scalar_select %p2144_p0, [#allocation5], [#allocation56] }
 0x165   : > { %s380_s2 = sshll.u32 %s567_s9, 4  ;;  %s1921_s2 = int_to_ptr.vmem [resolvable:$true] %s380_s2 }
 0x166   : > { %s1898_s3 = sld [smem:[%s724_s19 + %s2186_s6]] }
 0x167   : > { %s661_s18 = sshll.u32 %s334_s11, 4 }
 0x168   : > { %s336_s24 = scalar_lea.hbm %s2106_s1, %s661_s18 }
 0x169   : > { %s1119_s14 = scalar_lea.hbm %s336_s24, 16  ;;  %p1124_p5 = scmp.lt.u32.totalorder %s336_s24, %s2106_s1 }
 0x16a   : > { %p1120_p9 = scmp.ne.s32.totalorder %s336_s24, %s1119_s14  ;;  %p1125_p6 = scmp.lt.u32.totalorder %s1559_s30, %s1119_s14 }
 0x16b   : > { %p1127_p7 = scmp.lt.u32.totalorder %s1119_s14, %s336_s24 }
 0x16c   : > { %p1121_p10 = pnand %p1120_p9, %p2144_p0  ;;  %p1126_p8 = por %p1125_p6, %p1124_p5 }
 0x16e   : > { %p1122_p12 = pneg %p1121_p10  ;;  %p1128_p11 = por %p1127_p7, %p1126_p8 }
 0x170   : > { %p1129_p3 = pnand %p1128_p11, %p1122_p12 }
 0x172   : > { %1132 = shalt.err (!%p1129_p3)  }
 0x173   : > { %s1133_s26 = scalar_lea.vmem %s1829_s15, 16  ;;  %p1140_p1 = scmp.lt.s32.totalorder %s1829_s15, %s1571_s20 }
 0x174   : > { %p1134_p2 = scmp.ne.s32.totalorder %s1829_s15, %s1133_s26  ;;  %p1141_p9 = scmp.lt.s32.totalorder %s1574_s28, %s1133_s26 }
 0x176   : > { %p1135_p13 = pnand %p1134_p2, %p2144_p0  ;;  %p1142_p10 = por %p1141_p9, %p1140_p1 }
 0x178   : > { %p1136_p4 = pneg %p1135_p13 }
 0x17a   : > { %p1143_p5 = pnand %p1142_p10, %p1136_p4 }
 0x17c   : > { %1146 = shalt.err (!%p1143_p5)  }
 0x17d   : > { %720 = dma.hbm_to_vmem [thread:$0]  (%p2144_p0), %s336_s24, 16, %s1829_s15, %s1833_s27 }
 0x17e   : > { %s663_s11 = sshll.u32 %s1888_s12, 4 }
 0x17f   : > { %s353_s19 = scalar_lea.hbm %s2106_s1, %s663_s11 }
 0x180   : > { %s1147_s18 = scalar_lea.hbm %s353_s19, 16  ;;  %p1152_p7 = scmp.lt.u32.totalorder %s353_s19, %s2106_s1 }
 0x181   : > { %p1148_p12 = scmp.ne.s32.totalorder %s353_s19, %s1147_s18  ;;  %p1153_p11 = scmp.lt.u32.totalorder %s1559_s30, %s1147_s18 }
 0x182   : > { %p1155_p2 = scmp.lt.u32.totalorder %s1147_s18, %s353_s19 }
 0x183   : > { %p1149_p6 = pnand %p1148_p12, %p2144_p0  ;;  %p1154_p3 = por %p1153_p11, %p1152_p7 }
 0x185   : > { %p1150_p8 = pneg %p1149_p6  ;;  %p1156_p13 = por %p1155_p2, %p1154_p3 }
 0x187   : > { %p1157_p4 = pnand %p1156_p13, %p1150_p8 }
 0x189   : > { %1160 = shalt.err (!%p1157_p4)  }
 0x18a   : > { %s1161_s15 = scalar_lea.vmem %s1885_s22, 16  ;;  %p1168_p5 = scmp.lt.s32.totalorder %s1885_s22, %s1571_s20 }
 0x18b   : > { %p1162_p1 = scmp.ne.s32.totalorder %s1885_s22, %s1161_s15  ;;  %p1169_p12 = scmp.lt.s32.totalorder %s1574_s28, %s1161_s15 }
 0x18d   : > { %p1163_p9 = pnand %p1162_p1, %p2144_p0  ;;  %p1170_p6 = por %p1169_p12, %p1168_p5 }
 0x18f   : > { %p1164_p10 = pneg %p1163_p9 }
 0x191   : > { %p1171_p7 = pnand %p1170_p6, %p1164_p10 }
 0x193   : > { %1174 = shalt.err (!%p1171_p7)  }
 0x194   : > { %723 = dma.hbm_to_vmem [thread:$0]  (%p2144_p0), %s353_s19, 16, %s1885_s22, %s1833_s27 }
 0x195   : > { %s727_s12 = scalar_select %p2144_p0, [#allocation5], [#allocation57] }
 0x196   : > { %s665_s24 = sshll.u32 %s1898_s3, 4  ;;  %s384_s14 = sadd.s32 5, %s1779_s0 }
 0x197   : > { %s370_s26 = scalar_lea.hbm %s2106_s1, %s665_s24  ;;  %s572_s11 = scalar_lea.vmem %s1809_s5, 5 [#allocation2] }
 0x198   : > { %s1175_s6 = scalar_lea.hbm %s370_s26, 16  ;;  %p1180_p2 = scmp.lt.u32.totalorder %s370_s26, %s2106_s1 }
 0x199   : > { %p1176_p8 = scmp.ne.s32.totalorder %s370_s26, %s1175_s6  ;;  %p1181_p13 = scmp.lt.u32.totalorder %s1559_s30, %s1175_s6 }
 0x19a   : > { %p1183_p1 = scmp.lt.u32.totalorder %s1175_s6, %s370_s26 }
 0x19b   : > { %p1177_p11 = pnand %p1176_p8, %p2144_p0  ;;  %p1182_p4 = por %p1181_p13, %p1180_p2 }
 0x19d   : > { %p1178_p3 = pneg %p1177_p11  ;;  %p1184_p9 = por %p1183_p1, %p1182_p4 }
 0x19f   : > { %p1185_p10 = pnand %p1184_p9, %p1178_p3 }
 0x1a1   : > { %1188 = shalt.err (!%p1185_p10)  }
 0x1a2   : > { %s1189_s22 = scalar_lea.vmem %s1921_s2, 16  ;;  %p1196_p7 = scmp.lt.s32.totalorder %s1921_s2, %s1571_s20 }
 0x1a3   : > { %p1190_p5 = scmp.ne.s32.totalorder %s1921_s2, %s1189_s22  ;;  %p1197_p8 = scmp.lt.s32.totalorder %s1574_s28, %s1189_s22 }
 0x1a5   : > { %p1191_p12 = pnand %p1190_p5, %p2144_p0  ;;  %p1198_p11 = por %p1197_p8, %p1196_p7 }
 0x1a7   : > { %p1192_p6 = pneg %p1191_p12 }
 0x1a9   : > { %p1199_p2 = pnand %p1198_p11, %p1192_p6 }
 0x1ab   : > { %1202 = shalt.err (!%p1199_p2)  }
 0x1ac   : > { %726 = dma.hbm_to_vmem [thread:$0]  (%p2144_p0), %s370_s26, 16, %s1921_s2, %s1833_s27 }
 0x1ad   : > { %s2188_s14 = smov (!%p2144_p0, %s384_s14), 0  ;;  %s397_s3 = sshll.u32 %s572_s11, 4  ;;  %s1976_s3 = int_to_ptr.vmem [resolvable:$true] %s397_s3 }
 0x1ae   : > { %s401_s19 = sadd.s32 6, %s1779_s0  ;;  %s385_s13 = sld [smem:[%s727_s12 + %s2188_s14]] }
 0x1af   : > { %s577_s29 = scalar_lea.vmem %s1809_s5, 6 [#allocation2]  ;;  %s2190_s19 = smov (!%p2144_p0, %s401_s19), 0 }
 0x1b0   : > { %s730_s15 = scalar_select %p2144_p0, [#allocation5], [#allocation58] }
 0x1b1   : > { %s414_s16 = sshll.u32 %s577_s29, 4  ;;  %s418_s26 = sadd.s32 7, %s1779_s0  ;;  %s1986_s16 = int_to_ptr.vmem [resolvable:$true] %s414_s16 }
 0x1b2   : > { %s1978_s24 = sld [smem:[%s730_s15 + %s2190_s19]] }
 0x1b3   : > { %s733_s2 = scalar_select %p2144_p0, [#allocation5], [#allocation59] }
 0x1b4   : > { %s667_s17 = sshll.u32 %s385_s13, 4 }
 0x1b5   : > { %s387_s9 = scalar_lea.hbm %s2106_s1, %s667_s17 }
 0x1b6   : > { %s1203_s12 = scalar_lea.hbm %s387_s9, 16  ;;  %p1208_p1 = scmp.lt.u32.totalorder %s387_s9, %s2106_s1 }
 0x1b7   : > { %p1204_p3 = scmp.ne.s32.totalorder %s387_s9, %s1203_s12  ;;  %p1209_p9 = scmp.lt.u32.totalorder %s1559_s30, %s1203_s12 }
 0x1b8   : > { %p1211_p5 = scmp.lt.u32.totalorder %s1203_s12, %s387_s9 }
 0x1b9   : > { %p1205_p13 = pnand %p1204_p3, %p2144_p0  ;;  %p1210_p10 = por %p1209_p9, %p1208_p1 }
 0x1bb   : > { %p1206_p4 = pneg %p1205_p13  ;;  %p1212_p12 = por %p1211_p5, %p1210_p10 }
 0x1bd   : > { %p1213_p6 = pnand %p1212_p12, %p1206_p4 }
 0x1bf   : > { %1216 = shalt.err (!%p1213_p6)  }
 0x1c0   : > { %s1217_s0 = scalar_lea.vmem %s1976_s3, 16  ;;  %p1224_p2 = scmp.lt.s32.totalorder %s1976_s3, %s1571_s20 }
 0x1c1   : > { %p1218_p7 = scmp.ne.s32.totalorder %s1976_s3, %s1217_s0  ;;  %p1225_p3 = scmp.lt.s32.totalorder %s1574_s28, %s1217_s0 }
 0x1c3   : > { %p1219_p8 = pnand %p1218_p7, %p2144_p0  ;;  %p1226_p13 = por %p1225_p3, %p1224_p2 }
 0x1c5   : > { %p1220_p11 = pneg %p1219_p8 }
 0x1c7   : > { %p1227_p1 = pnand %p1226_p13, %p1220_p11 }
 0x1c9   : > { %1230 = shalt.err (!%p1227_p1)  }
 0x1ca   : > { %729 = dma.hbm_to_vmem [thread:$0]  (%p2144_p0), %s387_s9, 16, %s1976_s3, %s1833_s27 }
 0x1cb   : > { %s2192_s26 = smov (!%p2144_p0, %s418_s26), 0  ;;  %s669_s22 = sshll.u32 %s1978_s24, 4 }
 0x1cc   : > { %s582_s19 = scalar_lea.vmem %s1809_s5, 7 [#allocation2]  ;;  %s404_s15 = scalar_lea.hbm %s2106_s1, %s669_s22 }
 0x1cd   : > { %s419_s17 = sld [smem:[%s733_s2 + %s2192_s26]]  ;;  %s1231_s11 = scalar_lea.hbm %s404_s15, 16 }
 0x1ce   : > { %p1232_p4 = scmp.ne.s32.totalorder %s404_s15, %s1231_s11  ;;  %p1236_p5 = scmp.lt.u32.totalorder %s404_s15, %s2106_s1 }
 0x1cf   : > { %p1237_p12 = scmp.lt.u32.totalorder %s1559_s30, %s1231_s11  ;;  %p1239_p7 = scmp.lt.u32.totalorder %s1231_s11, %s404_s15 }
 0x1d0   : > { %p1233_p9 = pnand %p1232_p4, %p2144_p0 }
 0x1d1   : > { %p1238_p6 = por %p1237_p12, %p1236_p5 }
 0x1d2   : > { %p1234_p10 = pneg %p1233_p9 }
 0x1d3   : > { %p1240_p8 = por %p1239_p7, %p1238_p6 }
 0x1d5   : > { %p1241_p11 = pnand %p1240_p8, %p1234_p10 }
 0x1d7   : > { %1244 = shalt.err (!%p1241_p11)  }
 0x1d8   : > { %s1245_s5 = scalar_lea.vmem %s1986_s16, 16  ;;  %p1252_p1 = scmp.lt.s32.totalorder %s1986_s16, %s1571_s20 }
 0x1d9   : > { %p1246_p2 = scmp.ne.s32.totalorder %s1986_s16, %s1245_s5  ;;  %p1253_p4 = scmp.lt.s32.totalorder %s1574_s28, %s1245_s5 }
 0x1db   : > { %p1247_p3 = pnand %p1246_p2, %p2144_p0  ;;  %p1254_p9 = por %p1253_p4, %p1252_p1 }
 0x1dd   : > { %p1248_p13 = pneg %p1247_p3 }
 0x1df   : > { %p1255_p5 = pnand %p1254_p9, %p1248_p13 }
 0x1e1   : > { %1258 = shalt.err (!%p1255_p5)  }
 0x1e2   : > { %732 = dma.hbm_to_vmem [thread:$0]  (%p2144_p0), %s404_s15, 16, %s1986_s16, %s1833_s27 }
 0x1e3   : > { %s431_s3 = sshll.u32 %s582_s19, 4  ;;  %s671_s24 = sshll.u32 %s419_s17, 4  ;;  %s432_s3 = int_to_ptr.vmem [resolvable:$true] %s431_s3 }
 0x1e4   : > { %s421_s9 = scalar_lea.hbm %s2106_s1, %s671_s24 }
 0x1e5   : > { %s1259_s14 = scalar_lea.hbm %s421_s9, 16  ;;  %p1264_p7 = scmp.lt.u32.totalorder %s421_s9, %s2106_s1 }
 0x1e6   : > { %p1260_p10 = scmp.ne.s32.totalorder %s421_s9, %s1259_s14  ;;  %p1265_p8 = scmp.lt.u32.totalorder %s1559_s30, %s1259_s14 }
 0x1e7   : > { %p1267_p2 = scmp.lt.u32.totalorder %s1259_s14, %s421_s9 }
 0x1e8   : > { %p1261_p12 = pnand %p1260_p10, %p2144_p0  ;;  %p1266_p11 = por %p1265_p8, %p1264_p7 }
 0x1ea   : > { %p1262_p6 = pneg %p1261_p12  ;;  %p1268_p3 = por %p1267_p2, %p1266_p11 }
 0x1ec   : > { %p1269_p13 = pnand %p1268_p3, %p1262_p6 }
 0x1ee   : > { %1272 = shalt.err (!%p1269_p13)  }
 0x1ef   : > { %s1273_s16 = scalar_lea.vmem %s432_s3, 16  ;;  %p1280_p5 = scmp.lt.s32.totalorder %s432_s3, %s1571_s20 }
 0x1f0   : > { %p1274_p1 = scmp.ne.s32.totalorder %s432_s3, %s1273_s16  ;;  %p1281_p10 = scmp.lt.s32.totalorder %s1574_s28, %s1273_s16 }
 0x1f2   : > { %p1275_p4 = pnand %p1274_p1, %p2144_p0  ;;  %p1282_p12 = por %p1281_p10, %p1280_p5 }
 0x1f4   : > { %p1276_p9 = pneg %p1275_p4 }
 0x1f6   : > { %p1283_p7 = pnand %p1282_p12, %p1276_p9 }
 0x1f8   : > { %1286 = shalt.err (!%p1283_p7)  }
 0x1f9   : > { %735 = dma.hbm_to_vmem [thread:$0]  (%p2144_p0), %s421_s9, 16, %s432_s3, %s1833_s27 }
 0x1fa   : > { %s134_s30 = scalar_lea.vmem [#allocation9], %s1511_s8 }
 0x1fb   : > { %1345 = dma.done.wait %s1550_s10, 128 }
 0x1fc   : > { %1346 = vsyncadd %s1550_s10, 4294967168  ;;  %v441_v0 = vld [vmem:[%s1528_s21] sm:$0xff]  ;;  %v443_v1 = vld [vmem:[#allocation6] sm:$0xff]  ;;  %s675_s20 = sshll.u32 %s1365_s25, 7  ;;  %s461_s28 = sshll.u32 %s134_s30, 4  ;;  %s2058_s28 = int_to_ptr.vmem [resolvable:$true] %s461_s28 }
 0x1fd   : > { %v442_v2 = vmul.f32 11.313708, %v441_v0  ;;  %s2146_s19 = sld [smem:[#allocation72_spill]]  ;;  %s2147_s27 = sand.u32 1, %s1357_s23  }
 0x1fe   : > { %s447_s10 = scalar_lea.sflag [#allocation8], %s2147_s27  ;;  %s1287_s8 = scalar_lea.vmem %s2058_s28, 128 }
 0x1ff   : > { %v444_v3 = vadd.f32 %v443_v1, %v442_v2  ;;  %p1288_p0 = scmp.ne.s32.totalorder %s2058_s28, %s1287_s8  ;;  %p2148_p6 = scmp.ne.s32.totalorder %s2132_s4, 0 }
 0x200   : > { %s1378_s25 = smov [#allocation9]  }
 0x201   : > { %445 = vst [vmem:[%s134_s30] sm:$0xff] %v444_v3  ;;  %p1289_p8 = pnand %p1288_p0, %p2148_p6  ;;  %s1291_s21 = sshll.u32 %s1378_s25, 4  ;;  %s1292_s21 = int_to_ptr.vmem [resolvable:$false] %s1291_s21 }
 0x202   : > { %s1293_s29 = scalar_lea.vmem %s1292_s21, 256  ;;  %p1294_p2 = scmp.lt.s32.totalorder %s2058_s28, %s1292_s21 }
 0x203   : > { %s2056_s13 = scalar_lea.hbm %s2146_s19, %s675_s20  ;;  %p1290_p11 = pneg %p1289_p8 }
 0x204   : > { %p1295_p3 = scmp.lt.s32.totalorder %s1293_s29, %s1287_s8 }
 0x206   : > { %p1296_p13 = por %p1295_p3, %p1294_p2 }
 0x208   : > { %p1297_p1 = pnand %p1296_p13, %p1290_p11 }
 0x20a   : > { %1300 = shalt.err (!%p1297_p1)
}
 0x20b   : > { %s1301_s15 = scalar_lea.hbm %s2056_s13, 128  ;;  %s1305_s6 = scalar_lea.hbm %s2146_s19, 256 }
 0x20c   : > { %p1302_p4 = scmp.ne.s32.totalorder %s2056_s13, %s1301_s15  ;;  %p1306_p10 = scmp.lt.u32.totalorder %s2056_s13, %s2146_s19 }
 0x20d   : > { %p1307_p12 = scmp.lt.u32.totalorder %s1305_s6, %s1301_s15  ;;  %p1309_p0 = scmp.lt.u32.totalorder %s1301_s15, %s2056_s13 }
 0x20e   : > { %p1303_p9 = pnand %p1302_p4, %p2148_p6 }
 0x20f   : > { %p1308_p7 = por %p1307_p12, %p1306_p10 }
 0x210   : > { %p1304_p5 = pneg %p1303_p9 }
 0x211   : > { %p1310_p8 = por %p1309_p0, %p1308_p7 }
 0x213   : > { %p1311_p11 = pnand %p1310_p8, %p1304_p5 }
 0x215   : > { %1314 = shalt.err (!%p1311_p11)
}
 0x216   : > { %736 = dma.vmem_to_hbm [thread:$0]  (%p2148_p6), %s2058_s28, 128, %s2056_s13, %s447_s10  }
 0x217 PF: > { %s2149_s3 = sld [smem:[#allocation67_spill]]  ;;  %s2150_s24 = sld [smem:[#allocation64_spill]] }
 0x218   : > { %s2151_s2 = sld [smem:[#allocation69_spill]] }
 0x21d   : > { %p750_p2 = scmp.ge.s32.totalorder %s2149_s3, 2  ;;  %s473_s26 = sand.u32 1, %s2150_s24  }
 0x21e   : > { %p2152_p3 = scmp.ne.s32.totalorder %s2151_s2, 0  ;;  %s474_s9 = scalar_lea.sflag [#allocation8], %s473_s26 }
 0x220   : > { %p743_p13 = pnand %p750_p2, %p2152_p3 }
 0x222   : > { %1348 = dma.done.wait (!%p743_p13), %s474_s9, 128  }
 0x223   : > { %1350 = vsyncadd (!%p743_p13), %s474_s9, 4294967168  ;;  %s21_s27 = sadd.s32 1, %s2149_s3   ;;  %s2153_s14 = sld [smem:[#allocation65_spill]] }
 0x224   : > { %p18_p1 = scmp.ge.s32.totalorder %s21_s27, 4   ;;  %s2154_s24 = sld [smem:[#allocation70_spill]] }
 0x225   : > { %s2155_s25 = sld [smem:[#allocation66_spill]]  ;;  %s2156_s26 = sld [smem:[#allocation68_spill]] }
 0x226   : > { %s2157_s22 = smov %s1357_s23  ;;  %20 = sbr.rel (!%p18_p1) target bundleno = 18 (0x12), region = 171 }
 0x229   : > { %s2158_s23 = smov %s2153_s14 }
 0x22d   :  { %479 = vsyncpa [#allocation7], 1 }
 0x22e   :  { %481 = vsyncpa [#allocation7 + $0x1], 1 }
 0x22f   :  { %482 = vsyncpa [#allocation8], 1 }
 0x230   :  { %484 = vsyncpa [#allocation8 + $0x1], 1 }
 0x231   :  { %485 = vsyncmov [#allocation3] }
 0x234   :  { %s486_s4 = vpop.sfrf %485 }
 0x235   :  { %p678_p6 = scmp.ne.s32.totalorder %s486_s4, 0 }
 0x237   :  { %490 = shalt.err (%p678_p6)  }
 0x238   :  { %492 = vsyncmov [#allocation3 + $0x1] }
 0x23b   :  { %s493_s18 = vpop.sfrf %492 }
 0x23c   :  { %p679_p4 = scmp.ne.s32.totalorder %s493_s18, 0 }
 0x23e   :  { %497 = shalt.err (%p679_p4)  }

</bundles_post_ra>
